<compile_context>
chip_gen: v7x
topology: tpu7x:2x2x1
jax: 0.10.0
libtpu: 0.0.40
codegen_flags: <defaults>
</compile_context>

<pallas_src>
import functools
import math

import jax
import jax.numpy as jnp
from jax.experimental import pallas as pl
from jax.experimental.pallas import tpu as pltpu


# ----------------------------------------------------------------------------
# small math helpers (pure jnp; usable inside the kernel and in the reference)
# ----------------------------------------------------------------------------
def _layernorm(x, w, b, eps=1e-5):
    # PyTorch LayerNorm: biased variance over last dim.
    mu = jnp.mean(x, axis=-1, keepdims=True)
    var = jnp.mean((x - mu) ** 2, axis=-1, keepdims=True)
    return (x - mu) * jax.lax.rsqrt(var + eps) * w + b


def _gelu_exact(x):
    # PyTorch F.gelu default (approximate='none'): 0.5*x*(1+erf(x/sqrt(2)))
    return 0.5 * x * (1.0 + jax.lax.erf(x * (1.0 / math.sqrt(2.0))))


# ----------------------------------------------------------------------------
# kernel: whole encoder, grid = (batch, layer)
# ----------------------------------------------------------------------------
def _encoder_kernel(
    x_ref,                 # (1, S, H)  f32 input activations (fetched once per batch elem)
    wqkv_ref, bqkv_ref,    # (1, H, 3H) bf16 (q-scale folded), (1, 1, 3H) f32
    wo_ref, bo_ref,        # (1, H, H)  bf16, (1, 1, H) f32
    ln1w_ref, ln1b_ref,    # (1, 1, H)  f32
    w1_ref, b1_ref,        # (1, H, F)  bf16, (1, 1, F) f32
    w2_ref, b2_ref,        # (1, F, H)  bf16, (1, 1, H) f32
    ln2w_ref, ln2b_ref,    # (1, 1, H)  f32
    o_ref,                 # (1, S, H)  f32 layer-resident activations / final output
    *, num_heads,
):
    layer = pl.program_id(1)

    # Layer 0: seed the resident activation block from the input.
    @pl.when(layer == 0)
    def _():
        o_ref[...] = x_ref[...]

    x = o_ref[0]                                    # (S, H) f32 residual path
    S, H = x.shape
    hd = H // num_heads
    f32, bf16 = jnp.float32, jnp.bfloat16

    # ---- fused, lane-dense QKV projection: one (S,H) @ (H,3H) matmul ---------
    qkv = jnp.dot(x.astype(bf16), wqkv_ref[0],
                  preferred_element_type=f32) + bqkv_ref[0]        # (S, 3H) f32

    # ---- per-head attention (score/PV contractions are inherently hd-wide) ---
    ctx_heads = []
    for h in range(num_heads):
        qh = qkv[:, h * hd:(h + 1) * hd].astype(bf16)              # (S, hd)
        kh = qkv[:, H + h * hd:H + (h + 1) * hd].astype(bf16)
        vh = qkv[:, 2 * H + h * hd:2 * H + (h + 1) * hd].astype(bf16)

        # scores: 1/sqrt(hd) already folded into the Q weights/bias
        s = jax.lax.dot_general(qh, kh, (((1,), (1,)), ((), ())),
                                preferred_element_type=f32)        # (S, S) f32
        s = s - jnp.max(s, axis=-1, keepdims=True)
        e = jnp.exp(s)
        # deferred softmax normalization: PV matmul first, scale the small
        # (S, hd) context instead of the (S, S) probabilities.
        ctx = jnp.dot(e.astype(bf16), vh, preferred_element_type=f32)   # (S, hd)
        ctx = ctx * pl.reciprocal(jnp.sum(e, axis=-1, keepdims=True), approx=True)
        ctx_heads.append(ctx.astype(bf16))

    ctx_all = (ctx_heads[0] if num_heads == 1
               else jnp.concatenate(ctx_heads, axis=-1))           # (S, H) bf16

    # ---- out-projection: single lane-dense (S,H) @ (H,H) matmul --------------
    # (head reduction folded into the MXU contraction)
    attn = jnp.dot(ctx_all, wo_ref[0], preferred_element_type=f32) + bo_ref[0]

    x = _layernorm(x + attn, ln1w_ref[0], ln1b_ref[0])

    # ---- feed-forward ---------------------------------------------------------
    h1 = _gelu_exact(jnp.dot(x.astype(bf16), w1_ref[0],
                             preferred_element_type=f32) + b1_ref[0])   # (S, F)
    h2 = jnp.dot(h1.astype(bf16), w2_ref[0],
                 preferred_element_type=f32) + b2_ref[0]                # (S, H)

    x = _layernorm(x + h2, ln2w_ref[0], ln2b_ref[0])

    o_ref[0] = x.astype(o_ref.dtype)


# ----------------------------------------------------------------------------
# wrapper
# ----------------------------------------------------------------------------
_WEIGHT_KEYS = ("wqkv", "bqkv", "wo", "bo", "ln1w", "ln1b",
                "w1", "b1", "w2", "b2", "ln2w", "ln2b")


def _weight_spec(shape):
    """Weights are stacked with a leading layer axis; select layer `l`."""
    nd = len(shape)
    return pl.BlockSpec((1,) + tuple(shape[1:]),
                        lambda b, l, _nd=nd: (l,) + (0,) * (_nd - 1))


@functools.lru_cache(maxsize=None)
def _vmem_limit_bytes():
    # Raise the scoped-VMEM limit with headroom under the chip's physical VMEM
    # (v7x: 64 MiB -> 48 MiB; v5e/v6e: 128 MiB -> 96 MiB).
    try:
        cap = int(pltpu.get_tpu_info().vmem_capacity_bytes)
    except Exception:
        cap = 64 * 1024 * 1024
    return max(32 * 1024 * 1024, (cap * 3) // 4)


def bert_encoder(seq, packed, num_heads):
    """seq: (S, B, H) like PyTorch (batch_first=False). Returns (S, B, H)."""
    x = jnp.transpose(seq, (1, 0, 2)).astype(jnp.float32)       # -> (B, S, H)
    B, S, H = x.shape
    L = packed["wqkv"].shape[0]
    assert H % num_heads == 0

    kernel = functools.partial(_encoder_kernel, num_heads=num_heads)
    w_args = [packed[k] for k in _WEIGHT_KEYS]

    in_specs = [pl.BlockSpec((1, S, H), lambda b, l: (b, 0, 0))]
    in_specs += [_weight_spec(w.shape) for w in w_args]

    out = pl.pallas_call(
        kernel,
        out_shape=jax.ShapeDtypeStruct((B, S, H), jnp.float32),
        grid=(B, L),                                             # layer axis serial, last
        in_specs=in_specs,
        out_specs=pl.BlockSpec((1, S, H), lambda b, l: (b, 0, 0)),  # resident across layers
        compiler_params=pltpu.CompilerParams(
            dimension_semantics=("parallel", "arbitrary"),
            vmem_limit_bytes=_vmem_limit_bytes()),
    )(x, *w_args)
    return jnp.transpose(out, (1, 0, 2))


# ----------------------------------------------------------------------------
# parameter construction (PyTorch layout) and one-time kernel packing
# ----------------------------------------------------------------------------
def make_layer_params(key, hidden, ffn):
    ks = jax.random.split(key, 4)
    s = 0.02
    f32 = jnp.float32
    return dict(
        # MultiheadAttention in_proj / out_proj (PyTorch shapes)
        wqkv=(jax.random.normal(ks[0], (3 * hidden, hidden), f32) * s),
        bqkv=jnp.zeros((1, 3 * hidden), f32),
        wo=(jax.random.normal(ks[1], (hidden, hidden), f32) * s),
        bo=jnp.zeros((1, hidden), f32),
        # LayerNorm 1
        ln1w=jnp.ones((1, hidden), f32),
        ln1b=jnp.zeros((1, hidden), f32),
        # Feed-forward
        w1=(jax.random.normal(ks[2], (ffn, hidden), f32) * s),
        b1=jnp.zeros((1, ffn), f32),
        w2=(jax.random.normal(ks[3], (hidden, ffn), f32) * s),
        b2=jnp.zeros((1, hidden), f32),
        # LayerNorm 2
        ln2w=jnp.ones((1, hidden), f32),
        ln2b=jnp.zeros((1, hidden), f32),
    )


def pack_params(layer_params, num_heads):
    """One-time host-side packing: transpose, QKV fusion, 1/sqrt(hd) fold into
    the Q columns, bf16 cast of matmul weights, stack over layers."""
    H = layer_params[0]["wo"].shape[0]
    hd = H // num_heads
    scale = 1.0 / math.sqrt(hd)
    bf16, f32 = jnp.bfloat16, jnp.float32
    scale_vec = jnp.concatenate([jnp.full((H,), scale, f32),
                                 jnp.ones((2 * H,), f32)])        # scale only Q columns

    def pack_one(p):
        wqkv = jnp.transpose(p["wqkv"]) * scale_vec[None, :]      # (H, 3H)
        bqkv = p["bqkv"].reshape(1, 3 * H) * scale_vec[None, :]   # (1, 3H)
        return dict(
            wqkv=wqkv.astype(bf16),
            bqkv=bqkv.astype(f32),
            wo=jnp.transpose(p["wo"]).astype(bf16),               # (H, H)
            bo=p["bo"].astype(f32),                               # (1, H)
            ln1w=p["ln1w"].astype(f32), ln1b=p["ln1b"].astype(f32),
            w1=jnp.transpose(p["w1"]).astype(bf16),               # (H, F)
            b1=p["b1"].astype(f32),
            w2=jnp.transpose(p["w2"]).astype(bf16),               # (F, H)
            b2=p["b2"].astype(f32),
            ln2w=p["ln2w"].astype(f32), ln2b=p["ln2b"].astype(f32),
        )

    per_layer = [pack_one(p) for p in layer_params]
    return {k: jnp.stack([d[k] for d in per_layer], axis=0) for k in per_layer[0]}


# ----------------------------------------------------------------------------
# pure-JAX f32 reference (PyTorch semantics) for a correctness check
# ----------------------------------------------------------------------------
def _ref_layer(x, p, num_heads):
    B, S, H = x.shape
    hd = H // num_heads
    qkv = x @ p["wqkv"].T + p["bqkv"][0]                       # (B,S,3H)
    q, k, v = qkv[..., :H], qkv[..., H:2 * H], qkv[..., 2 * H:]

    def split(t):                                              # -> (B,nh,S,hd)
        return t.reshape(B, S, num_heads, hd).transpose(0, 2, 1, 3)

    q, k, v = split(q), split(k), split(v)
    s = jnp.einsum('bnsd,bntd->bnst', q, k) / math.sqrt(hd)
    a = jax.nn.softmax(s, axis=-1)
    ctx = jnp.einsum('bnst,bntd->bnsd', a, v)
    ctx = ctx.transpose(0, 2, 1, 3).reshape(B, S, H)
    attn = ctx @ p["wo"].T + p["bo"][0]
    x = _layernorm(x + attn, p["ln1w"][0], p["ln1b"][0])
    h1 = _gelu_exact(x @ p["w1"].T + p["b1"][0])
    h2 = h1 @ p["w2"].T + p["b2"][0]
    return _layernorm(x + h2, p["ln2w"][0], p["ln2b"][0])


def _ref_encoder(seq, params, num_heads):
    x = jnp.transpose(seq, (1, 0, 2))
    for p in params:
        x = _ref_layer(x, p, num_heads)
    return jnp.transpose(x, (1, 0, 2))


# ----------------------------------------------------------------------------
if __name__ == "__main__":
    # Small shapes consistent with the module: hidden=32, heads=4, ffn=64, layers=2.
    SEQ, BATCH, HIDDEN, HEADS, FFN, LAYERS = 8, 2, 32, 4, 64, 2

    root = jax.random.PRNGKey(0)
    k_in, k_params = jax.random.split(root)
    seq = jax.random.normal(k_in, (SEQ, BATCH, HIDDEN), jnp.float32)

    layer_keys = jax.random.split(k_params, LAYERS)
    params = [make_layer_params(k, HIDDEN, FFN) for k in layer_keys]
    packed = pack_params(params, HEADS)          # one-time packing (layer-stacked)

    out = bert_encoder(seq, packed, HEADS)
    out = jax.block_until_ready(out)

    assert out.shape == (SEQ, BATCH, HIDDEN)
    assert bool(jnp.all(jnp.isfinite(out)))

    # Compare against f32 PyTorch-faithful reference (kernel uses bf16 matmul
    # operands + approx reciprocal, so a loose tolerance is expected).
    ref = _ref_encoder(seq, params, HEADS)
    max_err = float(jnp.max(jnp.abs(out - ref)))
    assert max_err < 5e-2, f"max abs err {max_err}"

    print("KERNEL_OK")
</pallas_src>

<mosaic_0001>
module attributes {stable_mosaic.version = 11 : i64} {
  func.func @_encoder_kernel(%arg0: i32, %arg1: i32, %arg2: memref<1x8x32xf32, #tpu.memory_space<vmem>>, %arg3: memref<1x32x96xbf16, #tpu.memory_space<vmem>>, %arg4: memref<1x1x96xf32, #tpu.memory_space<vmem>>, %arg5: memref<1x32x32xbf16, #tpu.memory_space<vmem>>, %arg6: memref<1x1x32xf32, #tpu.memory_space<vmem>>, %arg7: memref<1x1x32xf32, #tpu.memory_space<vmem>>, %arg8: memref<1x1x32xf32, #tpu.memory_space<vmem>>, %arg9: memref<1x32x64xbf16, #tpu.memory_space<vmem>>, %arg10: memref<1x1x64xf32, #tpu.memory_space<vmem>>, %arg11: memref<1x64x32xbf16, #tpu.memory_space<vmem>>, %arg12: memref<1x1x32xf32, #tpu.memory_space<vmem>>, %arg13: memref<1x1x32xf32, #tpu.memory_space<vmem>>, %arg14: memref<1x1x32xf32, #tpu.memory_space<vmem>>, %arg15: memref<1x8x32xf32, #tpu.memory_space<vmem>>) attributes {dimension_semantics = [#tpu.dimension_semantics<parallel>, #tpu.dimension_semantics<arbitrary>], iteration_bounds = array<i64: 2, 2>, scalar_prefetch = 0 : i64, scratch_operands = 0 : i64, tpu.core_type = #tpu.core_type<tc>, window_params = [{transform_indices = @transform_0, window_bounds = array<i64: 1, 8, 32>}, {transform_indices = @transform_1, window_bounds = array<i64: 1, 32, 96>}, {transform_indices = @transform_2, window_bounds = array<i64: 1, 1, 96>}, {transform_indices = @transform_3, window_bounds = array<i64: 1, 32, 32>}, {transform_indices = @transform_4, window_bounds = array<i64: 1, 1, 32>}, {transform_indices = @transform_5, window_bounds = array<i64: 1, 1, 32>}, {transform_indices = @transform_6, window_bounds = array<i64: 1, 1, 32>}, {transform_indices = @transform_7, window_bounds = array<i64: 1, 32, 64>}, {transform_indices = @transform_8, window_bounds = array<i64: 1, 1, 64>}, {transform_indices = @transform_9, window_bounds = array<i64: 1, 64, 32>}, {transform_indices = @transform_10, window_bounds = array<i64: 1, 1, 32>}, {transform_indices = @transform_11, window_bounds = array<i64: 1, 1, 32>}, {transform_indices = @transform_12, window_bounds = array<i64: 1, 1, 32>}, {transform_indices = @transform_13, window_bounds = array<i64: 1, 8, 32>}]} {
    %c0_i32 = arith.constant 0 : i32
    %0 = arith.cmpi eq, %arg1, %c0_i32 : i32
    %1 = arith.extui %0 : i1 to i32
    %c0_i32_0 = arith.constant 0 : i32
    %2 = arith.cmpi ne, %1, %c0_i32_0 : i32
    scf.if %2 {
      %c0_74 = arith.constant 0 : index
      %c0_75 = arith.constant 0 : index
      %c0_76 = arith.constant 0 : index
      %182 = vector.load %arg2[%c0_74, %c0_75, %c0_76] : memref<1x8x32xf32, #tpu.memory_space<vmem>>, vector<1x8x32xf32>
      %c0_77 = arith.constant 0 : index
      %c0_78 = arith.constant 0 : index
      %c0_79 = arith.constant 0 : index
      %183 = vector.load %arg15[%c0_77, %c0_78, %c0_79] : memref<1x8x32xf32, #tpu.memory_space<vmem>>, vector<1x8x32xf32>
      tpu.vector_store %arg15[%c0_77, %c0_78, %c0_79], %182 {strides = array<i32>} : memref<1x8x32xf32, #tpu.memory_space<vmem>>, vector<1x8x32xf32>,
    } else {
    }
    %c0 = arith.constant 0 : index
    %c0_1 = arith.constant 0 : index
    %c0_2 = arith.constant 0 : index
    %3 = vector.load %arg15[%c0, %c0_1, %c0_2] : memref<1x8x32xf32, #tpu.memory_space<vmem>>, vector<1x8x32xf32>
    %4 = vector.shape_cast %3 : vector<1x8x32xf32> to vector<8x32xf32>
    %5 = arith.truncf %4 : vector<8x32xf32> to vector<8x32xbf16>
    %c0_3 = arith.constant 0 : index
    %c0_4 = arith.constant 0 : index
    %c0_5 = arith.constant 0 : index
    %6 = vector.load %arg3[%c0_3, %c0_4, %c0_5] : memref<1x32x96xbf16, #tpu.memory_space<vmem>>, vector<1x32x96xbf16>
    %7 = vector.shape_cast %6 : vector<1x32x96xbf16> to vector<32x96xbf16>
    %cst = arith.constant dense<0.000000e+00> : vector<8x96xf32>
    %8 = tpu.matmul %5, %7, %cst {dimension_numbers = #tpu.dot_dimension_numbers<[1], [0], [0], [1], [0, 0, 1, 1], [], []>} : vector<8x32xbf16>, vector<32x96xbf16>, vector<8x96xf32> -> vector<8x96xf32>
    %c0_6 = arith.constant 0 : index
    %c0_7 = arith.constant 0 : index
    %c0_8 = arith.constant 0 : index
    %9 = vector.load %arg4[%c0_6, %c0_7, %c0_8] : memref<1x1x96xf32, #tpu.memory_space<vmem>>, vector<1x1x96xf32>
    %10 = vector.shape_cast %9 : vector<1x1x96xf32> to vector<1x96xf32>
    %11 = vector.broadcast %10 : vector<1x96xf32> to vector<8x96xf32>
    %12 = arith.addf %8, %11 : vector<8x96xf32>
    %13 = vector.extract_strided_slice %12 {offsets = [0, 0], sizes = [8, 8], strides = [1, 1]} : vector<8x96xf32> to vector<8x8xf32>
    %14 = arith.truncf %13 : vector<8x8xf32> to vector<8x8xbf16>
    %15 = vector.extract_strided_slice %12 {offsets = [0, 32], sizes = [8, 8], strides = [1, 1]} : vector<8x96xf32> to vector<8x8xf32>
    %16 = arith.truncf %15 : vector<8x8xf32> to vector<8x8xbf16>
    %17 = vector.extract_strided_slice %12 {offsets = [0, 64], sizes = [8, 8], strides = [1, 1]} : vector<8x96xf32> to vector<8x8xf32>
    %18 = arith.truncf %17 : vector<8x8xf32> to vector<8x8xbf16>
    %cst_9 = arith.constant dense<0.000000e+00> : vector<8x8xf32>
    %19 = tpu.matmul %14, %16, %cst_9 {dimension_numbers = #tpu.dot_dimension_numbers<[1], [1], [0], [0], [0, 0, 1, 0], [], []>} : vector<8x8xbf16>, vector<8x8xbf16>, vector<8x8xf32> -> vector<8x8xf32>
    %cst_10 = arith.constant dense<0xFF800000> : vector<8xf32>
    %20 = vector.multi_reduction <maximumf>, %19, %cst_10 [1] : vector<8x8xf32> to vector<8xf32>
    %21 = vector.shape_cast %20 : vector<8xf32> to vector<8x1xf32>
    %22 = vector.broadcast %21 : vector<8x1xf32> to vector<8x8xf32>
    %23 = arith.subf %19, %22 : vector<8x8xf32>
    %24 = math.exp %23 : vector<8x8xf32>
    %25 = arith.truncf %24 : vector<8x8xf32> to vector<8x8xbf16>
    %cst_11 = arith.constant dense<0.000000e+00> : vector<8x8xf32>
    %26 = tpu.matmul %25, %18, %cst_11 {dimension_numbers = #tpu.dot_dimension_numbers<[1], [0], [0], [1], [0, 0, 1, 1], [], []>} : vector<8x8xbf16>, vector<8x8xbf16>, vector<8x8xf32> -> vector<8x8xf32>
    %cst_12 = arith.constant dense<0.000000e+00> : vector<8xf32>
    %27 = vector.multi_reduction <add>, %24, %cst_12 [1] : vector<8x8xf32> to vector<8xf32>
    %28 = vector.shape_cast %27 : vector<8xf32> to vector<8x1xf32>
    %29 = tpu.reciprocal %28 {approx = true} : vector<8x1xf32> -> vector<8x1xf32>
    %30 = vector.broadcast %29 : vector<8x1xf32> to vector<8x8xf32>
    %31 = arith.mulf %26, %30 : vector<8x8xf32>
    %32 = arith.truncf %31 : vector<8x8xf32> to vector<8x8xbf16>
    %33 = vector.extract_strided_slice %12 {offsets = [0, 8], sizes = [8, 8], strides = [1, 1]} : vector<8x96xf32> to vector<8x8xf32>
    %34 = arith.truncf %33 : vector<8x8xf32> to vector<8x8xbf16>
    %35 = vector.extract_strided_slice %12 {offsets = [0, 40], sizes = [8, 8], strides = [1, 1]} : vector<8x96xf32> to vector<8x8xf32>
    %36 = arith.truncf %35 : vector<8x8xf32> to vector<8x8xbf16>
    %37 = vector.extract_strided_slice %12 {offsets = [0, 72], sizes = [8, 8], strides = [1, 1]} : vector<8x96xf32> to vector<8x8xf32>
    %38 = arith.truncf %37 : vector<8x8xf32> to vector<8x8xbf16>
    %cst_13 = arith.constant dense<0.000000e+00> : vector<8x8xf32>
    %39 = tpu.matmul %34, %36, %cst_13 {dimension_numbers = #tpu.dot_dimension_numbers<[1], [1], [0], [0], [0, 0, 1, 0], [], []>} : vector<8x8xbf16>, vector<8x8xbf16>, vector<8x8xf32> -> vector<8x8xf32>
    %cst_14 = arith.constant dense<0xFF800000> : vector<8xf32>
    %40 = vector.multi_reduction <maximumf>, %39, %cst_14 [1] : vector<8x8xf32> to vector<8xf32>
    %41 = vector.shape_cast %40 : vector<8xf32> to vector<8x1xf32>
    %42 = vector.broadcast %41 : vector<8x1xf32> to vector<8x8xf32>
    %43 = arith.subf %39, %42 : vector<8x8xf32>
    %44 = math.exp %43 : vector<8x8xf32>
    %45 = arith.truncf %44 : vector<8x8xf32> to vector<8x8xbf16>
    %cst_15 = arith.constant dense<0.000000e+00> : vector<8x8xf32>
    %46 = tpu.matmul %45, %38, %cst_15 {dimension_numbers = #tpu.dot_dimension_numbers<[1], [0], [0], [1], [0, 0, 1, 1], [], []>} : vector<8x8xbf16>, vector<8x8xbf16>, vector<8x8xf32> -> vector<8x8xf32>
    %cst_16 = arith.constant dense<0.000000e+00> : vector<8xf32>
    %47 = vector.multi_reduction <add>, %44, %cst_16 [1] : vector<8x8xf32> to vector<8xf32>
    %48 = vector.shape_cast %47 : vector<8xf32> to vector<8x1xf32>
    %49 = tpu.reciprocal %48 {approx = true} : vector<8x1xf32> -> vector<8x1xf32>
    %50 = vector.broadcast %49 : vector<8x1xf32> to vector<8x8xf32>
    %51 = arith.mulf %46, %50 : vector<8x8xf32>
    %52 = arith.truncf %51 : vector<8x8xf32> to vector<8x8xbf16>
    %53 = vector.extract_strided_slice %12 {offsets = [0, 16], sizes = [8, 8], strides = [1, 1]} : vector<8x96xf32> to vector<8x8xf32>
    %54 = arith.truncf %53 : vector<8x8xf32> to vector<8x8xbf16>
    %55 = vector.extract_strided_slice %12 {offsets = [0, 48], sizes = [8, 8], strides = [1, 1]} : vector<8x96xf32> to vector<8x8xf32>
    %56 = arith.truncf %55 : vector<8x8xf32> to vector<8x8xbf16>
    %57 = vector.extract_strided_slice %12 {offsets = [0, 80], sizes = [8, 8], strides = [1, 1]} : vector<8x96xf32> to vector<8x8xf32>
    %58 = arith.truncf %57 : vector<8x8xf32> to vector<8x8xbf16>
    %cst_17 = arith.constant dense<0.000000e+00> : vector<8x8xf32>
    %59 = tpu.matmul %54, %56, %cst_17 {dimension_numbers = #tpu.dot_dimension_numbers<[1], [1], [0], [0], [0, 0, 1, 0], [], []>} : vector<8x8xbf16>, vector<8x8xbf16>, vector<8x8xf32> -> vector<8x8xf32>
    %cst_18 = arith.constant dense<0xFF800000> : vector<8xf32>
    %60 = vector.multi_reduction <maximumf>, %59, %cst_18 [1] : vector<8x8xf32> to vector<8xf32>
    %61 = vector.shape_cast %60 : vector<8xf32> to vector<8x1xf32>
    %62 = vector.broadcast %61 : vector<8x1xf32> to vector<8x8xf32>
    %63 = arith.subf %59, %62 : vector<8x8xf32>
    %64 = math.exp %63 : vector<8x8xf32>
    %65 = arith.truncf %64 : vector<8x8xf32> to vector<8x8xbf16>
    %cst_19 = arith.constant dense<0.000000e+00> : vector<8x8xf32>
    %66 = tpu.matmul %65, %58, %cst_19 {dimension_numbers = #tpu.dot_dimension_numbers<[1], [0], [0], [1], [0, 0, 1, 1], [], []>} : vector<8x8xbf16>, vector<8x8xbf16>, vector<8x8xf32> -> vector<8x8xf32>
    %cst_20 = arith.constant dense<0.000000e+00> : vector<8xf32>
    %67 = vector.multi_reduction <add>, %64, %cst_20 [1] : vector<8x8xf32> to vector<8xf32>
    %68 = vector.shape_cast %67 : vector<8xf32> to vector<8x1xf32>
    %69 = tpu.reciprocal %68 {approx = true} : vector<8x1xf32> -> vector<8x1xf32>
    %70 = vector.broadcast %69 : vector<8x1xf32> to vector<8x8xf32>
    %71 = arith.mulf %66, %70 : vector<8x8xf32>
    %72 = arith.truncf %71 : vector<8x8xf32> to vector<8x8xbf16>
    %73 = vector.extract_strided_slice %12 {offsets = [0, 24], sizes = [8, 8], strides = [1, 1]} : vector<8x96xf32> to vector<8x8xf32>
    %74 = arith.truncf %73 : vector<8x8xf32> to vector<8x8xbf16>
    %75 = vector.extract_strided_slice %12 {offsets = [0, 56], sizes = [8, 8], strides = [1, 1]} : vector<8x96xf32> to vector<8x8xf32>
    %76 = arith.truncf %75 : vector<8x8xf32> to vector<8x8xbf16>
    %77 = vector.extract_strided_slice %12 {offsets = [0, 88], sizes = [8, 8], strides = [1, 1]} : vector<8x96xf32> to vector<8x8xf32>
    %78 = arith.truncf %77 : vector<8x8xf32> to vector<8x8xbf16>
    %cst_21 = arith.constant dense<0.000000e+00> : vector<8x8xf32>
    %79 = tpu.matmul %74, %76, %cst_21 {dimension_numbers = #tpu.dot_dimension_numbers<[1], [1], [0], [0], [0, 0, 1, 0], [], []>} : vector<8x8xbf16>, vector<8x8xbf16>, vector<8x8xf32> -> vector<8x8xf32>
    %cst_22 = arith.constant dense<0xFF800000> : vector<8xf32>
    %80 = vector.multi_reduction <maximumf>, %79, %cst_22 [1] : vector<8x8xf32> to vector<8xf32>
    %81 = vector.shape_cast %80 : vector<8xf32> to vector<8x1xf32>
    %82 = vector.broadcast %81 : vector<8x1xf32> to vector<8x8xf32>
    %83 = arith.subf %79, %82 : vector<8x8xf32>
    %84 = math.exp %83 : vector<8x8xf32>
    %85 = arith.truncf %84 : vector<8x8xf32> to vector<8x8xbf16>
    %cst_23 = arith.constant dense<0.000000e+00> : vector<8x8xf32>
    %86 = tpu.matmul %85, %78, %cst_23 {dimension_numbers = #tpu.dot_dimension_numbers<[1], [0], [0], [1], [0, 0, 1, 1], [], []>} : vector<8x8xbf16>, vector<8x8xbf16>, vector<8x8xf32> -> vector<8x8xf32>
    %cst_24 = arith.constant dense<0.000000e+00> : vector<8xf32>
    %87 = vector.multi_reduction <add>, %84, %cst_24 [1] : vector<8x8xf32> to vector<8xf32>
    %88 = vector.shape_cast %87 : vector<8xf32> to vector<8x1xf32>
    %89 = tpu.reciprocal %88 {approx = true} : vector<8x1xf32> -> vector<8x1xf32>
    %90 = vector.broadcast %89 : vector<8x1xf32> to vector<8x8xf32>
    %91 = arith.mulf %86, %90 : vector<8x8xf32>
    %92 = arith.truncf %91 : vector<8x8xf32> to vector<8x8xbf16>
    %93 = tpu.concatenate %32, %52, %72, %92 in 1 : vector<8x8xbf16>, vector<8x8xbf16>, vector<8x8xbf16>, vector<8x8xbf16> -> vector<8x32xbf16>
    %c0_25 = arith.constant 0 : index
    %c0_26 = arith.constant 0 : index
    %c0_27 = arith.constant 0 : index
    %94 = vector.load %arg5[%c0_25, %c0_26, %c0_27] : memref<1x32x32xbf16, #tpu.memory_space<vmem>>, vector<1x32x32xbf16>
    %95 = vector.shape_cast %94 : vector<1x32x32xbf16> to vector<32x32xbf16>
    %cst_28 = arith.constant dense<0.000000e+00> : vector<8x32xf32>
    %96 = tpu.matmul %93, %95, %cst_28 {dimension_numbers = #tpu.dot_dimension_numbers<[1], [0], [0], [1], [0, 0, 1, 1], [], []>} : vector<8x32xbf16>, vector<32x32xbf16>, vector<8x32xf32> -> vector<8x32xf32>
    %c0_29 = arith.constant 0 : index
    %c0_30 = arith.constant 0 : index
    %c0_31 = arith.constant 0 : index
    %97 = vector.load %arg6[%c0_29, %c0_30, %c0_31] : memref<1x1x32xf32, #tpu.memory_space<vmem>>, vector<1x1x32xf32>
    %98 = vector.shape_cast %97 : vector<1x1x32xf32> to vector<1x32xf32>
    %99 = vector.broadcast %98 : vector<1x32xf32> to vector<8x32xf32>
    %100 = arith.addf %96, %99 : vector<8x32xf32>
    %101 = arith.addf %4, %100 : vector<8x32xf32>
    %c0_32 = arith.constant 0 : index
    %c0_33 = arith.constant 0 : index
    %c0_34 = arith.constant 0 : index
    %102 = vector.load %arg7[%c0_32, %c0_33, %c0_34] : memref<1x1x32xf32, #tpu.memory_space<vmem>>, vector<1x1x32xf32>
    %103 = vector.shape_cast %102 : vector<1x1x32xf32> to vector<1x32xf32>
    %c0_35 = arith.constant 0 : index
    %c0_36 = arith.constant 0 : index
    %c0_37 = arith.constant 0 : index
    %104 = vector.load %arg8[%c0_35, %c0_36, %c0_37] : memref<1x1x32xf32, #tpu.memory_space<vmem>>, vector<1x1x32xf32>
    %105 = vector.shape_cast %104 : vector<1x1x32xf32> to vector<1x32xf32>
    %cst_38 = arith.constant dense<0.000000e+00> : vector<8xf32>
    %106 = vector.multi_reduction <add>, %101, %cst_38 [1] : vector<8x32xf32> to vector<8xf32>
    %107 = vector.shape_cast %106 : vector<8xf32> to vector<8x1xf32>
    %cst_39 = arith.constant 3.200000e+01 : f32
    %108 = vector.broadcast %cst_39 : f32 to vector<8x1xf32>
    %109 = arith.divf %107, %108 : vector<8x1xf32>
    %110 = vector.broadcast %109 : vector<8x1xf32> to vector<8x32xf32>
    %111 = arith.subf %101, %110 : vector<8x32xf32>
    %112 = arith.mulf %111, %111 : vector<8x32xf32>
    %cst_40 = arith.constant dense<0.000000e+00> : vector<8xf32>
    %113 = vector.multi_reduction <add>, %112, %cst_40 [1] : vector<8x32xf32> to vector<8xf32>
    %114 = vector.shape_cast %113 : vector<8xf32> to vector<8x1xf32>
    %cst_41 = arith.constant 3.200000e+01 : f32
    %115 = vector.broadcast %cst_41 : f32 to vector<8x1xf32>
    %116 = arith.divf %114, %115 : vector<8x1xf32>
    %117 = vector.broadcast %109 : vector<8x1xf32> to vector<8x32xf32>
    %118 = arith.subf %101, %117 : vector<8x32xf32>
    %cst_42 = arith.constant 9.99999974E-6 : f32
    %119 = vector.broadcast %cst_42 : f32 to vector<8x1xf32>
    %120 = arith.addf %116, %119 : vector<8x1xf32>
    %121 = math.rsqrt %120 : vector<8x1xf32>
    %122 = vector.broadcast %121 : vector<8x1xf32> to vector<8x32xf32>
    %123 = arith.mulf %118, %122 : vector<8x32xf32>
    %124 = vector.broadcast %103 : vector<1x32xf32> to vector<8x32xf32>
    %125 = arith.mulf %123, %124 : vector<8x32xf32>
    %126 = vector.broadcast %105 : vector<1x32xf32> to vector<8x32xf32>
    %127 = arith.addf %125, %126 : vector<8x32xf32>
    %128 = arith.truncf %127 : vector<8x32xf32> to vector<8x32xbf16>
    %c0_43 = arith.constant 0 : index
    %c0_44 = arith.constant 0 : index
    %c0_45 = arith.constant 0 : index
    %129 = vector.load %arg9[%c0_43, %c0_44, %c0_45] : memref<1x32x64xbf16, #tpu.memory_space<vmem>>, vector<1x32x64xbf16>
    %130 = vector.shape_cast %129 : vector<1x32x64xbf16> to vector<32x64xbf16>
    %cst_46 = arith.constant dense<0.000000e+00> : vector<8x64xf32>
    %131 = tpu.matmul %128, %130, %cst_46 {dimension_numbers = #tpu.dot_dimension_numbers<[1], [0], [0], [1], [0, 0, 1, 1], [], []>} : vector<8x32xbf16>, vector<32x64xbf16>, vector<8x64xf32> -> vector<8x64xf32>
    %c0_47 = arith.constant 0 : index
    %c0_48 = arith.constant 0 : index
    %c0_49 = arith.constant 0 : index
    %132 = vector.load %arg10[%c0_47, %c0_48, %c0_49] : memref<1x1x64xf32, #tpu.memory_space<vmem>>, vector<1x1x64xf32>
    %133 = vector.shape_cast %132 : vector<1x1x64xf32> to vector<1x64xf32>
    %134 = vector.broadcast %133 : vector<1x64xf32> to vector<8x64xf32>
    %135 = arith.addf %131, %134 : vector<8x64xf32>
    %cst_50 = arith.constant 5.000000e-01 : f32
    %136 = vector.broadcast %cst_50 : f32 to vector<8x64xf32>
    %137 = arith.mulf %136, %135 : vector<8x64xf32>
    %cst_51 = arith.constant 0.707106769 : f32
    %138 = vector.broadcast %cst_51 : f32 to vector<8x64xf32>
    %139 = arith.mulf %135, %138 : vector<8x64xf32>
    %140 = math.erf %139 : vector<8x64xf32>
    %cst_52 = arith.constant 1.000000e+00 : f32
    %141 = vector.broadcast %cst_52 : f32 to vector<8x64xf32>
    %142 = arith.addf %141, %140 : vector<8x64xf32>
    %143 = arith.mulf %137, %142 : vector<8x64xf32>
    %144 = arith.truncf %143 : vector<8x64xf32> to vector<8x64xbf16>
    %c0_53 = arith.constant 0 : index
    %c0_54 = arith.constant 0 : index
    %c0_55 = arith.constant 0 : index
    %145 = vector.load %arg11[%c0_53, %c0_54, %c0_55] : memref<1x64x32xbf16, #tpu.memory_space<vmem>>, vector<1x64x32xbf16>
    %146 = vector.shape_cast %145 : vector<1x64x32xbf16> to vector<64x32xbf16>
    %cst_56 = arith.constant dense<0.000000e+00> : vector<8x32xf32>
    %147 = tpu.matmul %144, %146, %cst_56 {dimension_numbers = #tpu.dot_dimension_numbers<[1], [0], [0], [1], [0, 0, 1, 1], [], []>} : vector<8x64xbf16>, vector<64x32xbf16>, vector<8x32xf32> -> vector<8x32xf32>
    %c0_57 = arith.constant 0 : index
    %c0_58 = arith.constant 0 : index
    %c0_59 = arith.constant 0 : index
    %148 = vector.load %arg12[%c0_57, %c0_58, %c0_59] : memref<1x1x32xf32, #tpu.memory_space<vmem>>, vector<1x1x32xf32>
    %149 = vector.shape_cast %148 : vector<1x1x32xf32> to vector<1x32xf32>
    %150 = vector.broadcast %149 : vector<1x32xf32> to vector<8x32xf32>
    %151 = arith.addf %147, %150 : vector<8x32xf32>
    %152 = arith.addf %127, %151 : vector<8x32xf32>
    %c0_60 = arith.constant 0 : index
    %c0_61 = arith.constant 0 : index
    %c0_62 = arith.constant 0 : index
    %153 = vector.load %arg13[%c0_60, %c0_61, %c0_62] : memref<1x1x32xf32, #tpu.memory_space<vmem>>, vector<1x1x32xf32>
    %154 = vector.shape_cast %153 : vector<1x1x32xf32> to vector<1x32xf32>
    %c0_63 = arith.constant 0 : index
    %c0_64 = arith.constant 0 : index
    %c0_65 = arith.constant 0 : index
    %155 = vector.load %arg14[%c0_63, %c0_64, %c0_65] : memref<1x1x32xf32, #tpu.memory_space<vmem>>, vector<1x1x32xf32>
    %156 = vector.shape_cast %155 : vector<1x1x32xf32> to vector<1x32xf32>
    %cst_66 = arith.constant dense<0.000000e+00> : vector<8xf32>
    %157 = vector.multi_reduction <add>, %152, %cst_66 [1] : vector<8x32xf32> to vector<8xf32>
    %158 = vector.shape_cast %157 : vector<8xf32> to vector<8x1xf32>
    %cst_67 = arith.constant 3.200000e+01 : f32
    %159 = vector.broadcast %cst_67 : f32 to vector<8x1xf32>
    %160 = arith.divf %158, %159 : vector<8x1xf32>
    %161 = vector.broadcast %160 : vector<8x1xf32> to vector<8x32xf32>
    %162 = arith.subf %152, %161 : vector<8x32xf32>
    %163 = arith.mulf %162, %162 : vector<8x32xf32>
    %cst_68 = arith.constant dense<0.000000e+00> : vector<8xf32>
    %164 = vector.multi_reduction <add>, %163, %cst_68 [1] : vector<8x32xf32> to vector<8xf32>
    %165 = vector.shape_cast %164 : vector<8xf32> to vector<8x1xf32>
    %cst_69 = arith.constant 3.200000e+01 : f32
    %166 = vector.broadcast %cst_69 : f32 to vector<8x1xf32>
    %167 = arith.divf %165, %166 : vector<8x1xf32>
    %168 = vector.broadcast %160 : vector<8x1xf32> to vector<8x32xf32>
    %169 = arith.subf %152, %168 : vector<8x32xf32>
    %cst_70 = arith.constant 9.99999974E-6 : f32
    %170 = vector.broadcast %cst_70 : f32 to vector<8x1xf32>
    %171 = arith.addf %167, %170 : vector<8x1xf32>
    %172 = math.rsqrt %171 : vector<8x1xf32>
    %173 = vector.broadcast %172 : vector<8x1xf32> to vector<8x32xf32>
    %174 = arith.mulf %169, %173 : vector<8x32xf32>
    %175 = vector.broadcast %154 : vector<1x32xf32> to vector<8x32xf32>
    %176 = arith.mulf %174, %175 : vector<8x32xf32>
    %177 = vector.broadcast %156 : vector<1x32xf32> to vector<8x32xf32>
    %178 = arith.addf %176, %177 : vector<8x32xf32>
    %c0_71 = arith.constant 0 : index
    %c0_72 = arith.constant 0 : index
    %c0_73 = arith.constant 0 : index
    %179 = vector.load %arg15[%c0_71, %c0_72, %c0_73] : memref<1x8x32xf32, #tpu.memory_space<vmem>>, vector<1x8x32xf32>
    %180 = vector.shape_cast %179 : vector<1x8x32xf32> to vector<8x32xf32>
    %181 = vector.shape_cast %178 : vector<8x32xf32> to vector<1x8x32xf32>
    tpu.vector_store %arg15[%c0_71, %c0_72, %c0_73], %181 {strides = array<i32>} : memref<1x8x32xf32, #tpu.memory_space<vmem>>, vector<1x8x32xf32>,
    return
  }
  func.func @transform_0(%arg0: i32, %arg1: i32) -> (i32, i32, i32) {
    %c0_i32 = arith.constant 0 : i32
    %c0_i32_0 = arith.constant 0 : i32
    %c0_i32_1 = arith.constant 0 : i32
    return %arg0, %c0_i32, %c0_i32_0 : i32, i32, i32
  }
  func.func @transform_1(%arg0: i32, %arg1: i32) -> (i32, i32, i32) {
    %c0_i32 = arith.constant 0 : i32
    %c0_i32_0 = arith.constant 0 : i32
    %c0_i32_1 = arith.constant 0 : i32
    return %arg1, %c0_i32, %c0_i32_0 : i32, i32, i32
  }
  func.func @transform_2(%arg0: i32, %arg1: i32) -> (i32, i32, i32) {
    %c0_i32 = arith.constant 0 : i32
    %c0_i32_0 = arith.constant 0 : i32
    %c0_i32_1 = arith.constant 0 : i32
    return %arg1, %c0_i32, %c0_i32_0 : i32, i32, i32
  }
  func.func @transform_3(%arg0: i32, %arg1: i32) -> (i32, i32, i32) {
    %c0_i32 = arith.constant 0 : i32
    %c0_i32_0 = arith.constant 0 : i32
    %c0_i32_1 = arith.constant 0 : i32
    return %arg1, %c0_i32, %c0_i32_0 : i32, i32, i32
  }
  func.func @transform_4(%arg0: i32, %arg1: i32) -> (i32, i32, i32) {
    %c0_i32 = arith.constant 0 : i32
    %c0_i32_0 = arith.constant 0 : i32
    %c0_i32_1 = arith.constant 0 : i32
    return %arg1, %c0_i32, %c0_i32_0 : i32, i32, i32
  }
  func.func @transform_5(%arg0: i32, %arg1: i32) -> (i32, i32, i32) {
    %c0_i32 = arith.constant 0 : i32
    %c0_i32_0 = arith.constant 0 : i32
    %c0_i32_1 = arith.constant 0 : i32
    return %arg1, %c0_i32, %c0_i32_0 : i32, i32, i32
  }
  func.func @transform_6(%arg0: i32, %arg1: i32) -> (i32, i32, i32) {
    %c0_i32 = arith.constant 0 : i32
    %c0_i32_0 = arith.constant 0 : i32
    %c0_i32_1 = arith.constant 0 : i32
    return %arg1, %c0_i32, %c0_i32_0 : i32, i32, i32
  }
  func.func @transform_7(%arg0: i32, %arg1: i32) -> (i32, i32, i32) {
    %c0_i32 = arith.constant 0 : i32
    %c0_i32_0 = arith.constant 0 : i32
    %c0_i32_1 = arith.constant 0 : i32
    return %arg1, %c0_i32, %c0_i32_0 : i32, i32, i32
  }
  func.func @transform_8(%arg0: i32, %arg1: i32) -> (i32, i32, i32) {
    %c0_i32 = arith.constant 0 : i32
    %c0_i32_0 = arith.constant 0 : i32
    %c0_i32_1 = arith.constant 0 : i32
    return %arg1, %c0_i32, %c0_i32_0 : i32, i32, i32
  }
  func.func @transform_9(%arg0: i32, %arg1: i32) -> (i32, i32, i32) {
    %c0_i32 = arith.constant 0 : i32
    %c0_i32_0 = arith.constant 0 : i32
    %c0_i32_1 = arith.constant 0 : i32
    return %arg1, %c0_i32, %c0_i32_0 : i32, i32, i32
  }
  func.func @transform_10(%arg0: i32, %arg1: i32) -> (i32, i32, i32) {
    %c0_i32 = arith.constant 0 : i32
    %c0_i32_0 = arith.constant 0 : i32
    %c0_i32_1 = arith.constant 0 : i32
    return %arg1, %c0_i32, %c0_i32_0 : i32, i32, i32
  }
  func.func @transform_11(%arg0: i32, %arg1: i32) -> (i32, i32, i32) {
    %c0_i32 = arith.constant 0 : i32
    %c0_i32_0 = arith.constant 0 : i32
    %c0_i32_1 = arith.constant 0 : i32
    return %arg1, %c0_i32, %c0_i32_0 : i32, i32, i32
  }
  func.func @transform_12(%arg0: i32, %arg1: i32) -> (i32, i32, i32) {
    %c0_i32 = arith.constant 0 : i32
    %c0_i32_0 = arith.constant 0 : i32
    %c0_i32_1 = arith.constant 0 : i32
    return %arg1, %c0_i32, %c0_i32_0 : i32, i32, i32
  }
  func.func @transform_13(%arg0: i32, %arg1: i32) -> (i32, i32, i32) {
    %c0_i32 = arith.constant 0 : i32
    %c0_i32_0 = arith.constant 0 : i32
    %c0_i32_1 = arith.constant 0 : i32
    return %arg0, %c0_i32, %c0_i32_0 : i32, i32, i32
  }
}

</mosaic_0001>

<bundles_post_ra>
// kernel: tpu_custom_call.1
= control target key start
LH: loop header
LB: loop body
LE: loop exit
PB: predicated region body
PF: predicated region fallthrough
CT: control target
= control target key end

     0   :  { %s3116_s0 = inlined_call_operand.hbm [shape: f32[2,8,32], index: 0, kind: input, shape index: {}]   ;;  %s3117_s1 = inlined_call_operand.vmem [shape: bf16[2,32,96], index: 1, kind: input, shape index: {}]   ;;  %s3118_s2 = inlined_call_operand.vmem [shape: f32[2,1,96], index: 2, kind: input, shape index: {}]   ;;  %s3119_s3 = inlined_call_operand.vmem [shape: bf16[2,32,32], index: 3, kind: input, shape index: {}]   ;;  %s3120_s4 = inlined_call_operand.hbm [shape: f32[2,1,32], index: 4, kind: input, shape index: {}]   ;;  %s3121_s5 = inlined_call_operand.hbm [shape: f32[2,1,32], index: 5, kind: input, shape index: {}]   ;;  %s3122_s6 = inlined_call_operand.hbm [shape: f32[2,1,32], index: 6, kind: input, shape index: {}]   ;;  %s3123_s7 = inlined_call_operand.vmem [shape: bf16[2,32,64], index: 7, kind: input, shape index: {}]   ;;  %s3124_s8 = inlined_call_operand.hbm [shape: f32[2,1,64], index: 8, kind: input, shape index: {}]   ;;  %s3125_s9 = inlined_call_operand.vmem [shape: bf16[2,64,32], index: 9, kind: input, shape index: {}]   ;;  %s3126_s10 = inlined_call_operand.vmem [shape: f32[2,1,32], index: 10, kind: input, shape index: {}]   ;;  %s3127_s11 = inlined_call_operand.vmem [shape: f32[2,1,32], index: 11, kind: input, shape index: {}]   ;;  %s3128_s12 = inlined_call_operand.vmem [shape: f32[2,1,32], index: 12, kind: input, shape index: {}]   ;;  %s3129_s13 = inlined_call_operand.hbm [shape: f32[2,8,32], index: 13, kind: output, shape index: {}]  }
   0x1   :  { %3153 = sst [smem:[#allocation31_spill]] %s3116_s0 }
   0x2   :  { %3154 = sst [smem:[#allocation32_spill]] %s3117_s1 }
   0x3   :  { %3155 = sst [smem:[#allocation33_spill]] %s3118_s2 }
   0x4   :  { %3156 = sst [smem:[#allocation34_spill]] %s3119_s3 }
   0x5   :  { %3157 = sst [smem:[#allocation35_spill]] %s3120_s4 }
   0x6   :  { %3158 = sst [smem:[#allocation36_spill]] %s3121_s5 }
   0x7   :  { %3159 = sst [smem:[#allocation37_spill]] %s3122_s6 }
   0x8   :  { %3160 = sst [smem:[#allocation38_spill]] %s3123_s7 }
   0x9   :  { %3161 = sst [smem:[#allocation39_spill]] %s3124_s8 }
   0xa   :  { %3162 = sst [smem:[#allocation40_spill]] %s3125_s9 }
   0xb   :  { %3163 = sst [smem:[#allocation41_spill]] %s3126_s10 }
   0xc   :  { %3164 = sst [smem:[#allocation42_spill]] %s3127_s11 }
   0xd   :  { %3165 = sst [smem:[#allocation43_spill]] %s3128_s12 }
   0xe   :  { %3166 = sst [smem:[#allocation44_spill]] %s3129_s13 }
   0xf   :  { %18 = vsyncpa [#allocation3], 0 }
  0x10   :  { %20 = vsyncpa [#allocation3 + $0x1], 0 }
  0x11   :  { %21 = vsyncpa [#allocation6], 0 }
  0x12   :  { %23 = vsyncpa [#allocation6 + $0x1], 0 }
  0x13   :  { %24 = vsyncpa [#allocation9], 0 }
  0x14   :  { %26 = vsyncpa [#allocation9 + $0x1], 0 }
  0x15   :  { %27 = vsyncpa [#allocation4], 0 }
  0x16   :  { %29 = vsyncpa [#allocation4 + $0x1], 0  ;;  %s2529_s25 = smov 0   ;;  %s2531_s26 = smov 0  }
  0x17   :  { %s2533_s27 = smov 0   ;;  %s2535_s28 = smov 0  }
  0x18   :  { %s2537_s29 = smov 0   ;;  %s2539_s30 = smov 0  }
  0x19   :  { %s2541_s14 = smov 0   ;;  %s2543_s15 = smov 0  }
  0x1a   :  { %s2545_s16 = smov 0   ;;  %s2547_s17 = smov 0  }
  0x1b   :  { %s2549_s18 = smov 0  }
  0x1c LB: > { %3167 = sst [smem:[#allocation16_spill]] %s2399_s26  ;;  %s44_s19 = sadd.s32 1, %s2427_s16  ;;  %s2435_s18 = sphi %s2549_s18, %s35_s18   ;;  %s2431_s17 = sphi %s2547_s17, %s3243_s17   ;;  %s2427_s16 = sphi %s2545_s16, %s3242_s16   ;;  %s2423_s15 = sphi %s2543_s15, %s3241_s15   ;;  %s2419_s14 = sphi %s2541_s14, %s3240_s14   ;;  %s2415_s30 = sphi %s2539_s30, %s3239_s30   ;;  %s2411_s29 = sphi %s2537_s29, %s3238_s29   ;;  %s2407_s28 = sphi %s2535_s28, %s3237_s28   ;;  %s2403_s27 = sphi %s2533_s27, %s3236_s27   ;;  %s2399_s26 = sphi %s2531_s26, %s3235_s26   ;;  %s2395_s25 = sphi %s2529_s25, %s3234_s25  }
  0x1d   : > { %3168 = sst [smem:[#allocation17_spill]] %s2403_s27  ;;  %p3135_p0 = scmp.eq.s32.totalorder %s2435_s18, 0 }
  0x1e   : > { %3169 = sst [smem:[#allocation18_spill]] %s2407_s28  ;;  %p2586_p1 = scmp.ge.s32.totalorder %s44_s19, 2 }
  0x1f   : > { %3170 = sst [smem:[#allocation19_spill]] %s2411_s29  ;;  %s158_s21 = sadd.s32 1, %s2403_s27 }
  0x20   : > { %3171 = sst [smem:[#allocation20_spill]] %s2415_s30  ;;  %p165_p2 = scmp.ne.s32.totalorder %s2403_s27, %s2399_s26 }
  0x21   : > { %3172 = sst [smem:[#allocation21_spill]] %s2419_s14  ;;  %s3245_s19 = smov (%p2586_p1, %s44_s19), 0 }
  0x22   : > { %3173 = sst [smem:[#allocation22_spill]] %s2423_s15  ;;  %p167_p4 = por %p165_p2, %p3135_p0 }
  0x23   : > { %3174 = sst [smem:[#allocation23_spill]] %s2427_s16  ;;  %s155_s22 = ssub.s32 %s2427_s16, %s3245_s19 }
  0x24   : > { %3175 = sst [smem:[#allocation24_spill]] %s2431_s17  ;;  %p3134_p5 = scmp.lt.s32.totalorder %s2435_s18, 4 }
  0x25   : > { %s3176_s20 = scalar_select %p2586_p1, 1, 0 }
  0x26   : > { %3177 = sst [smem:[#allocation25_spill]] %s3245_s19  ;;  %p156_p6 = scmp.eq.s32.totalorder %s155_s22, 0 }
  0x27   : > { %s3136_s23 = sand.u32 1, %s2435_s18   ;;  %s2606_s24 = sand.u32 1, %s2403_s27  }
  0x28   : > { %s2609_s13 = scalar_select %p156_p6, %s2403_s27, %s158_s21  }
  0x29   : > { %s2612_s15 = sshll.u32 %s2427_s16, 4  ;;  %s3179_s4 = sld [smem:[#allocation35_spill]] }
  0x2a   : > { %3178 = sst [smem:[#allocation26_spill]] %s2609_s13  ;;  %s472_s19 = scalar_lea.vmem [#allocation5], %s2606_s24 }
  0x2b   : > { %s479_s22 = sshll.u32 %s472_s19, 4  ;;  %p2625_p7 = pnand %p3134_p5, %p167_p4  ;;  %s2621_s22 = int_to_ptr.vmem [resolvable:$true] %s479_s22 }
  0x2c   : > { %s2633_s11 = scalar_lea.sflag [#allocation6], %s3136_s23 }
  0x2d   : > { %s3180_s21 = scalar_select %p2625_p7, 1, 0 }
  0x2e   : > { %p2639_p11 = pneg %p2625_p7 }
  0x2f   : > { %s2618_s10 = scalar_lea.hbm %s3179_s4, %s2612_s15  ;;  %s2160_s27 = scalar_lea.hbm %s3179_s4, 32 }
  0x30   : > { %s2155_s12 = scalar_lea.hbm %s2618_s10, 16  ;;  %p2161_p2 = scmp.lt.u32.totalorder %s2618_s10, %s3179_s4 }
  0x31   : > { %p2156_p10 = scmp.ne.s32.totalorder %s2618_s10, %s2155_s12  ;;  %p2162_p4 = scmp.lt.u32.totalorder %s2160_s27, %s2155_s12 }
  0x32   : > { %p2164_p5 = scmp.lt.u32.totalorder %s2155_s12, %s2618_s10 }
  0x33   : > { %p2158_p12 = pnand %p2639_p11, %p2156_p10  ;;  %p2163_p6 = por %p2162_p4, %p2161_p2 }
  0x35   : > { %p2159_p13 = pneg %p2158_p12  ;;  %p2165_p3 = por %p2164_p5, %p2163_p6 }
  0x37   : > { %p2166_p0 = pnand %p2165_p3, %p2159_p13 }
  0x39   : > { %2169 = shalt.err (!%p2166_p0)
}
  0x3a   : > { %s2170_s23 = scalar_lea.vmem %s2621_s22, 16  ;;  %s2437_s13 = smov [#allocation5]  }
  0x3b   : > { %p2171_p10 = scmp.ne.s32.totalorder %s2621_s22, %s2170_s23  ;;  %s2175_s19 = sshll.u32 %s2437_s13, 4  ;;  %s2176_s19 = int_to_ptr.vmem [resolvable:$false] %s2175_s19 }
  0x3c   : > { %s2177_s7 = scalar_lea.vmem %s2176_s19, 32  ;;  %p2178_p9 = scmp.lt.s32.totalorder %s2621_s22, %s2176_s19 }
  0x3d   : > { %p2173_p12 = pnand %p2171_p10, %p2639_p11  ;;  %p2179_p1 = scmp.lt.s32.totalorder %s2177_s7, %s2170_s23 }
  0x3f   : > { %p2174_p8 = pneg %p2173_p12  ;;  %p2180_p2 = por %p2179_p1, %p2178_p9 }
  0x41   : > { %p2181_p4 = pnand %p2180_p2, %p2174_p8 }
  0x43   : > { %2184 = shalt.err (!%p2181_p4)
}
  0x44   : > { %2003 = dma.hbm_to_vmem [thread:$0]  (!%p2625_p7), %s2618_s10, 16, %s2621_s22, %s2633_s11  }
  0x45   : > { %p3182_p0 = scmp.lt.s32.totalorder %s2435_s18, 5  ;;  %p3183_p3 = scmp.ge.s32.totalorder %s2435_s18, 1 }
  0x46   : > { %s3185_s6 = sld [smem:[#allocation37_spill]]  ;;  %s506_s13 = scalar_lea.vmem [#allocation8], %s2606_s24 }
  0x47   : > { %p2667_p5 = pnand %p3183_p3, %p3182_p0  ;;  %s513_s19 = sshll.u32 %s506_s13, 4  ;;  %s514_s19 = int_to_ptr.vmem [resolvable:$true] %s513_s19 }
  0x48   : > { %s3186_s7 = sand.u32 1, %s2435_s18  }
  0x49   : > { %s3184_s9 = scalar_select %p2667_p5, 1, 0 }
  0x4a   : > { %s2680_s10 = scalar_lea.sflag [#allocation9], %s3186_s7 }
  0x4c   : > { %s2675_s12 = scalar_lea.hbm %s3185_s6, %s2612_s15  ;;  %s2190_s27 = scalar_lea.hbm %s3185_s6, 32 }
  0x4d   : > { %s2185_s22 = scalar_lea.hbm %s2675_s12, 16  ;;  %p2191_p13 = scmp.lt.u32.totalorder %s2675_s12, %s3185_s6 }
  0x4e   : > { %p2186_p1 = scmp.ne.s32.totalorder %s2675_s12, %s2185_s22  ;;  %p2192_p6 = scmp.lt.u32.totalorder %s2190_s27, %s2185_s22 }
  0x4f   : > { %p2194_p12 = scmp.lt.u32.totalorder %s2185_s22, %s2675_s12 }
  0x50   : > { %p2188_p8 = pnand %p2186_p1, %p2639_p11  ;;  %p2193_p10 = por %p2192_p6, %p2191_p13 }
  0x52   : > { %p2189_p9 = pneg %p2188_p8  ;;  %p2195_p2 = por %p2194_p12, %p2193_p10 }
  0x54   : > { %p2196_p4 = pnand %p2195_p2, %p2189_p9 }
  0x56   : > { %2199 = shalt.err (!%p2196_p4)
}
  0x57   : > { %s2200_s13 = scalar_lea.vmem %s514_s19, 16  ;;  %s2438_s7 = smov [#allocation8]  }
  0x58   : > { %p2201_p0 = scmp.ne.s32.totalorder %s514_s19, %s2200_s13  ;;  %s2205_s2 = sshll.u32 %s2438_s7, 4  ;;  %s2206_s2 = int_to_ptr.vmem [resolvable:$false] %s2205_s2 }
  0x59   : > { %s2207_s3 = scalar_lea.vmem %s2206_s2, 32  ;;  %p2208_p8 = scmp.lt.s32.totalorder %s514_s19, %s2206_s2 }
  0x5a   : > { %p2203_p3 = pnand %p2201_p0, %p2639_p11  ;;  %p2209_p5 = scmp.lt.s32.totalorder %s2207_s3, %s2200_s13 }
  0x5c   : > { %p2204_p1 = pneg %p2203_p3  ;;  %p2210_p7 = por %p2209_p5, %p2208_p8 }
  0x5e   : > { %p2211_p6 = pnand %p2210_p7, %p2204_p1 }
  0x60   : > { %2214 = shalt.err (!%p2211_p6)
}
  0x61   : > { %p3187_p13 = scmp.ne.s32.totalorder %s3180_s21, 0  ;;  %s2701_s1 = sadd.s32 4294967295, %s2435_s18  }
  0x62   : > { %s1812_s2 = sadd.s32 4294967294, %s2435_s18   ;;  %s47_s4 = sadd.s32 1, %s2431_s17 }
  0x63   : > { %2009 = dma.hbm_to_vmem [thread:$0]  (!%p3187_p13), %s2675_s12, 16, %s514_s19, %s2680_s10  }
  0x64   : > { %p3188_p7 = scmp.ne.s32.totalorder %s3176_s20, 0  ;;  %s54_s22 = sadd.s32 1, %s2415_s30 }
  0x65   : > { %p61_p5 = scmp.ne.s32.totalorder %s2415_s30, %s2411_s29  ;;  %p67_p10 = scmp.ne.s32.totalorder %s2411_s29, %s2407_s28 }
  0x66   : > { %s3247_s4 = smov (!%p3188_p7, %s47_s4), %s2431_s17  ;;  %p3189_p12 = scmp.eq.s32.totalorder %s2435_s18, 0 }
  0x67   : > { %p49_p9 = scmp.ge.s32.totalorder %s3247_s4, 2  ;;  %p68_p4 = scmp.eq.s32.totalorder %s2701_s1, 0 }
  0x68   : > { %p2715_p2 = por %p3189_p12, %p61_p5  ;;  %p3193_p3 = scmp.ne.s32.totalorder %s2399_s26, %s2395_s25 }
  0x69   : > { %s3249_s4 = smov (%p49_p9, %s3247_s4), 0  ;;  %p2725_p0 = por %p68_p4, %p67_p10 }
  0x6a   : > { %3191 = sst [smem:[#allocation27_spill]] %s3249_s4  ;;  %p2732_p1 = por %p3193_p3, %p68_p4 }
  0x6b   : > { %s3192_s20 = scalar_select %p2725_p0, 1, 0 }
  0x6c   : > { %s3194_s19 = scalar_select %p2732_p1, 1, 0 }
  0x6d   : > { %s51_s27 = ssub.s32 %s2431_s17, %s3249_s4  ;;  %p403_p8 = scmp.eq.s32.totalorder %s2701_s1, 3 }
  0x6e   : > { %3195 = sst [smem:[#allocation28_spill]] %s3194_s19  ;;  %p52_p6 = scmp.eq.s32.totalorder %s51_s27, 0 }
  0x6f   : > { %p409_p7 = scmp.eq.s32.totalorder %s1812_s2, 3  ;;  %p2739_p9 = por %p403_p8, %p61_p5 }
  0x70   : > { %s429_s13 = sand.u32 1, %s2415_s30   ;;  %s1816_s6 = sshll.u32 %s2431_s17, 7 }
  0x71   : > { %s3196_s23 = scalar_select %p2739_p9, 1, 0 }
  0x72   : > { %s2745_s7 = scalar_select %p52_p6, %s2415_s30, %s54_s22  }
  0x73   : > { %p2750_p12 = por %p409_p7, %p67_p10  ;;  %s1815_s25 = sshll.u32 %s429_s13, 3 }
  0x74   : > { %3197 = sst [smem:[#allocation29_spill]] %s2745_s7  ;;  %s3200_s0 = sld [smem:[#allocation31_spill]] }
  0x75   : > { %s3198_s3 = scalar_select %p2750_p12, 1, 0 }
  0x76   : > { %s433_s2 = scalar_lea.vmem [#allocation2], %s1815_s25  ;;  %p3201_p5 = scmp.lt.s32.totalorder %s2435_s18, 4 }
  0x77   : > { %3199 = sst [smem:[#allocation30_spill]] %s3198_s3  ;;  %s440_s27 = sshll.u32 %s433_s2, 4  ;;  %s2768_s27 = int_to_ptr.vmem [resolvable:$true] %s440_s27 }
  0x78   : > { %p2764_p4 = pnand %p3201_p5, %p2715_p2  ;;  %s3203_s5 = sld [smem:[#allocation36_spill]] }
  0x79   : > { %s430_s19 = scalar_lea.sflag [#allocation3], %s429_s13 }
  0x7a   : > { %s2758_s4 = scalar_lea.hbm %s3200_s0, %s1816_s6  ;;  %p2217_p3 = pneg %p2764_p4 }
  0x7b   : > { %s2215_s7 = scalar_lea.hbm %s2758_s4, 128  ;;  %s2220_s2 = scalar_lea.hbm %s3200_s0, 256 }
  0x7c   : > { %p2216_p10 = scmp.ne.s32.totalorder %s2758_s4, %s2215_s7  ;;  %p2221_p6 = scmp.lt.u32.totalorder %s2758_s4, %s3200_s0 }
  0x7d   : > { %p2222_p7 = scmp.lt.u32.totalorder %s2220_s2, %s2215_s7  ;;  %p2224_p12 = scmp.lt.u32.totalorder %s2215_s7, %s2758_s4 }
  0x7e   : > { %s2774_s6 = scalar_lea.hbm %s3203_s5, %s2612_s15  ;;  %p2218_p2 = pnand %p2217_p3, %p2216_p10 }
  0x7f   : > { %p2223_p5 = por %p2222_p7, %p2221_p6 }
  0x80   : > { %p2219_p8 = pneg %p2218_p2 }
  0x81   : > { %p2225_p9 = por %p2224_p12, %p2223_p5 }
  0x83   : > { %p2226_p1 = pnand %p2225_p9, %p2219_p8 }
  0x85   : > { %2229 = shalt.err (!%p2226_p1)
}
  0x86   : > { %s2230_s17 = scalar_lea.vmem %s2768_s27, 128  ;;  %s2439_s13 = smov [#allocation2]  }
  0x87   : > { %p2231_p10 = scmp.ne.s32.totalorder %s2768_s27, %s2230_s17  ;;  %s2235_s14 = sshll.u32 %s2439_s13, 4  ;;  %s2236_s14 = int_to_ptr.vmem [resolvable:$false] %s2235_s14 }
  0x88   : > { %s2237_s30 = scalar_lea.vmem %s2236_s14, 256  ;;  %p2238_p13 = scmp.lt.s32.totalorder %s2768_s27, %s2236_s14 }
  0x89   : > { %p2233_p2 = pnand %p2231_p10, %p2217_p3  ;;  %p2239_p6 = scmp.lt.s32.totalorder %s2237_s30, %s2230_s17 }
  0x8b   : > { %p2234_p0 = pneg %p2233_p2  ;;  %p2240_p7 = por %p2239_p6, %p2238_p13 }
  0x8d   : > { %p2241_p12 = pnand %p2240_p7, %p2234_p0 }
  0x8f   : > { %2244 = shalt.err (!%p2241_p12)
}
  0x90   : > { %2000 = dma.hbm_to_vmem [thread:$0]  (!%p2764_p4), %s2758_s4, 128, %s2768_s27, %s430_s19  }
  0x91   : > { %s489_s7 = scalar_lea.vmem [#allocation7], %s2606_s24  ;;  %s3204_s8 = sld [smem:[#allocation39_spill]] }
  0x92   : > { %s496_s3 = sshll.u32 %s489_s7, 4  ;;  %s2245_s17 = scalar_lea.hbm %s2774_s6, 16  ;;  %s497_s3 = int_to_ptr.vmem [resolvable:$true] %s496_s3 }
  0x93   : > { %p2246_p13 = scmp.ne.s32.totalorder %s2774_s6, %s2245_s17  ;;  %s2250_s14 = scalar_lea.hbm %s3203_s5, 32 }
  0x94   : > { %p2251_p9 = scmp.lt.u32.totalorder %s2774_s6, %s3203_s5  ;;  %p2252_p4 = scmp.lt.u32.totalorder %s2250_s14, %s2245_s17 }
  0x95   : > { %p2248_p0 = pnand %p2246_p13, %p2639_p11  ;;  %p2254_p8 = scmp.lt.u32.totalorder %s2245_s17, %s2774_s6 }
  0x96   : > { %p2253_p3 = por %p2252_p4, %p2251_p9 }
  0x97   : > { %s2806_s2 = scalar_lea.hbm %s3204_s8, %s2612_s15  ;;  %p2249_p1 = pneg %p2248_p0 }
  0x98   : > { %p2255_p5 = por %p2254_p8, %p2253_p3 }
  0x9a   : > { %p2256_p10 = pnand %p2255_p5, %p2249_p1 }
  0x9c   : > { %2259 = shalt.err (!%p2256_p10)
}
  0x9d   : > { %s2260_s15 = scalar_lea.vmem %s497_s3, 16  ;;  %s2440_s4 = smov [#allocation7]  }
  0x9e   : > { %p2261_p2 = scmp.ne.s32.totalorder %s497_s3, %s2260_s15  ;;  %s2265_s27 = sshll.u32 %s2440_s4, 4  ;;  %s2266_s27 = int_to_ptr.vmem [resolvable:$false] %s2265_s27 }
  0x9f   : > { %s2267_s19 = scalar_lea.vmem %s2266_s27, 32  ;;  %p2268_p12 = scmp.lt.s32.totalorder %s497_s3, %s2266_s27 }
  0xa0   : > { %p2263_p6 = pnand %p2261_p2, %p2639_p11  ;;  %p2269_p13 = scmp.lt.s32.totalorder %s2267_s19, %s2260_s15 }
  0xa2   : > { %p2264_p7 = pneg %p2263_p6  ;;  %p2270_p0 = por %p2269_p13, %p2268_p12 }
  0xa4   : > { %p2271_p4 = pnand %p2270_p0, %p2264_p7 }
  0xa6   : > { %2274 = shalt.err (!%p2271_p4)
}
  0xa7   : > { %p3205_p9 = scmp.ne.s32.totalorder %s3180_s21, 0  ;;  %s531_s0 = scalar_lea.vmem [#allocation10], %s2606_s24 }
  0xa8   : > { %s538_s7 = sshll.u32 %s531_s0, 4  ;;  %s2275_s12 = scalar_lea.hbm %s2806_s2, 16  ;;  %s539_s7 = int_to_ptr.vmem [resolvable:$true] %s538_s7 }
  0xa9   : > { %2006 = dma.hbm_to_vmem [thread:$0]  (!%p3205_p9), %s2774_s6, 16, %s497_s3, %s2633_s11  }
  0xaa   : > { %p2276_p1 = scmp.ne.s32.totalorder %s2806_s2, %s2275_s12  ;;  %s2280_s22 = scalar_lea.hbm %s3204_s8, 32 }
  0xab   : > { %p2281_p5 = scmp.lt.u32.totalorder %s2806_s2, %s3204_s8  ;;  %p2282_p10 = scmp.lt.u32.totalorder %s2280_s22, %s2275_s12 }
  0xac   : > { %p2278_p3 = pnand %p2276_p1, %p2639_p11  ;;  %p2284_p6 = scmp.lt.u32.totalorder %s2275_s12, %s2806_s2 }
  0xad   : > { %p2283_p2 = por %p2282_p10, %p2281_p5 }
  0xae   : > { %p2279_p8 = pneg %p2278_p3 }
  0xaf   : > { %p2285_p7 = por %p2284_p6, %p2283_p2 }
  0xb1   : > { %p2286_p12 = pnand %p2285_p7, %p2279_p8 }
  0xb3   : > { %2289 = shalt.err (!%p2286_p12)
}
  0xb4   : > { %s2290_s24 = scalar_lea.vmem %s539_s7, 16  ;;  %s2441_s11 = smov [#allocation10]  }
  0xb5   : > { %p2291_p13 = scmp.ne.s32.totalorder %s539_s7, %s2290_s24  ;;  %s2295_s6 = sshll.u32 %s2441_s11, 4  ;;  %s2296_s6 = int_to_ptr.vmem [resolvable:$false] %s2295_s6 }
  0xb6   : > { %s2297_s3 = scalar_lea.vmem %s2296_s6, 32  ;;  %p2298_p1 = scmp.lt.s32.totalorder %s539_s7, %s2296_s6 }
  0xb7   : > { %p2293_p0 = pnand %p2291_p13, %p2639_p11  ;;  %p2299_p3 = scmp.lt.s32.totalorder %s2297_s3, %s2290_s24 }
  0xb9   : > { %p2294_p4 = pneg %p2293_p0  ;;  %p2300_p9 = por %p2299_p3, %p2298_p1 }
  0xbb   : > { %p2301_p5 = pnand %p2300_p9, %p2294_p4 }
  0xbd   : > { %2304 = shalt.err (!%p2301_p5)
}
  0xbe   : > { %p3206_p10 = scmp.ne.s32.totalorder %s3180_s21, 0  ;;  %p3207_p8 = scmp.ne.s32.totalorder %s3184_s9, 0 }
  0xbf   : > { %s2848_s16 = sand.u32 (!%p3207_p8), 1, %s2411_s29   ;;  %p3208_p11 = scmp.ne.s32.totalorder (!%p3207_p8), %s3192_s20, 0 }
  0xc0   : > { %2012 = dma.hbm_to_vmem [thread:$0]  (!%p3206_p10), %s2806_s2, 16, %s539_s7, %s2680_s10  }
  0xc1   : > { %573 = sbr.rel (%p3207_p8) target bundleno = 2641 (0xa51), region = 72  ;;  %s1822_s30 = sshll.u32 (!%p3207_p8), %s2848_s16, 3 }
  0xc2   : > { %s576_s15 = scalar_lea.sflag (!%p3207_p8), [#allocation3], %s2848_s16  ;;  %s579_s4 = scalar_lea.vmem (!%p3207_p8), [#allocation2], %s1822_s30 }
  0xc8   : > { %2378 = dma.done.wait (%p3208_p11), %s576_s15, 128  }
  0xc9   : > { %2380 = vsyncadd (%p3208_p11), %s576_s15, 4294967168  ;;  %s3209_s21 = sld [smem:[#allocation28_spill]]  ;;  %s584_s10 = sand.u32 1, %s2701_s1  }
  0xca   : > { %s2858_s9 = sand.u32 1, %s2399_s26   ;;  %s585_s2 = scalar_lea.sflag [#allocation6], %s584_s10 }
  0xcf   : > { %p3210_p9 = scmp.ne.s32.totalorder %s3209_s21, 0 }
  0xd1   : > { %2382 = dma.done.wait (%p3210_p9), %s585_s2, 32  }
  0xd2   : > { %2384 = vsyncadd (%p3210_p9), %s585_s2, 4294967264  ;;  %s601_s20 = scalar_lea.sflag [#allocation9], %s584_s10 }
  0xd3   : > { %2386 = dma.done.wait (%p3210_p9), %s601_s20, 32  }
  0xd4   : > { %2388 = vsyncadd (%p3210_p9), %s601_s20, 4294967264  ;;  %s3211_s1 = sld [smem:[#allocation21_spill]]  ;;  %s3214_s21 = sld [smem:[#allocation34_spill]] }
  0xd5   : > { %s3213_s11 = sld [smem:[#allocation32_spill]]  ;;  %s3215_s0 = sld [smem:[#allocation38_spill]] }
  0xd6   : > { %s3216_s29 = sld [smem:[#allocation40_spill]]  ;;  %s3217_s14 = sld [smem:[#allocation41_spill]] }
  0xd7   : > { %s3218_s3 = sld [smem:[#allocation42_spill]]  ;;  %s3219_s28 = sld [smem:[#allocation43_spill]] }
  0xda   : > { %p702_p2 = scmp.lt.s32.totalorder %s3211_s1, 1  ;;  %p1832_p6 = scmp.ne.s32.totalorder %s3211_s1, 0 }
  0xdb   : > { %v739_v0 = vld [vmem:[%s579_s4] sm:$0xff] (!%p1832_p6)  ;;  %vm740_vm0 = vcmask (!%p1832_p6), 261120  }
  0xdc   : > { %s2873_s7 = scalar_select %p702_p2, %s3211_s1, 1 }
  0xdd   : > { %738 = sbr.rel (%p1832_p6) target bundleno = 229 (0xe5), region = 96 }
  0xde   : > { %s1867_s12 = sshll.u32 %s2873_s7, 4  ;;  %s1870_s27 = sshll.u32 %s2873_s7, 5 }
  0xdf   : > { %s706_s6 = scalar_lea.vmem %s3213_s11, %s1867_s12  ;;  %s2886_s10 = scalar_lea.vmem %s3214_s21, %s1867_s12 }
  0xe0   : > { %s2891_s19 = scalar_lea.vmem %s3215_s0, %s1867_s12  ;;  %s2897_s25 = scalar_lea.vmem %s3216_s29, %s1870_s27 }
  0xe1   : > { %s727_s24 = scalar_lea.vmem %s3217_s14, %s2873_s7  ;;  %s730_s15 = scalar_lea.vmem %s3218_s3, %s2873_s7 }
  0xe2   : > { %s733_s2 = scalar_lea.vmem %s3219_s28, %s2873_s7  ;;  %s611_s0 = scalar_lea.vmem [#allocation10], %s2858_s9 }
  0xe3   : > { %s2912_s12 = scalar_lea.vmem [#allocation11], %s1822_s30 }
  0xe4   : > { %741 = vst.msk [vmem:[%s2912_s12] sm:$0xff] %vm740_vm0, %v739_v0 }
  0xe5 PF: > { %v2123_v1 = vld [vmem:[%s706_s6] sm:$0xff]   ;;  %v2442_v2 = vmov 0.0   ;;  %v2124_v3 = vld [vmem:[%s706_s6 + $0x8] sm:$0xff]   ;;  %vm2443_vm1 = vmmov 0   ;;  %vm767_vm2 = vcmask 261120   ;;  %s3220_s26 = sld [smem:[#allocation33_spill]] }
  0xe6   : > { %1901 = vmatprep.subr.bf16.mxu0 %v2442_v2  ;;  %1909 = vmatprep.subr.bf16.mxu1 %v2442_v2  ;;  %s2444_s29 = smov 120   ;;  %s2445_s30 = smov 96   ;;  %vm815_vm3 = vcmask 64512   ;;  %vm874_vm4 = vcmask 1043456   ;;  %vm1269_vm5 = vcmask 130048   ;;  %vm1272_vm6 = vcmask 195584  }
  0xe7   : > { %1902 = vmatpush3.bf16.msra.mxu0 %v2123_v1  ;;  %1905 = vmatprep.mubr.msk.bf16.mxu0 %vm2443_vm1, %v2442_v2  ;;  %s2446_s4 = smov 80   ;;  %s2447_s27 = smov 88   ;;  %vm1483_vm7 = vcmask 523264  }
  0xe8   : > { %1903 = vmatprep.subr.bf16.mxu0 %v2442_v2  ;;  %1911 = vmatprep.mubr.msk.bf16.mxu1 %vm2443_vm1, %v2442_v2  ;;  %s2448_s1 = smov 72   ;;  %s2449_s13 = smov 112  }
  0xe9   : > { %s2450_s6 = smov 104   ;;  %s2451_s20 = smov 56  }
  0xea   : > { %s2452_s17 = smov 64   ;;  %s2453_s22 = smov 40  }
  0xeb   : > { %v2921_v4 = vld [vmem:[%s2912_s12] sm:$0xff]  ;;  %1904 = vmatpush3.bf16.msra.mxu0 %v2124_v3  ;;  %s3221_s28 = scalar_lea.vmem %s3220_s26, %s2873_s7  ;;  %s2454_s14 = smov 48  }
  0xec   : > { %v743_v5 = vpack.c.bf16 %v2921_v4, %v2921_v4  ;;  %1915 = vmatprep.subr.bf16.mxu0 %v2442_v2  ;;  %v1833_v6 = vld [vmem:[%s3221_s28] ss:$0 sm:$0xff]  ;;  %s2455_s11 = smov 8   ;;  %s2456_s3 = smov 16  }
  0xed   : > { %s3222_s21 = scalar_lea.vmem [#allocation5], %s2858_s9  ;;  %s3223_s5 = scalar_lea.vmem [#allocation7], %s2858_s9 }
  0xee   : > { %1906 = vmatmul.mubr.msk.bf16.vlgmr.msra.gmra.mrb[0].mxu0 %vm767_vm2, %v743_v5  ;;  %s3224_s8 = scalar_lea.vmem [#allocation8], %s2858_s9  ;;  %s3226_s9 = sld [smem:[#allocation22_spill]] }
  0xef   : > { %1917 = vmatprep.mubr.msk.bf16.mxu0 %vm2443_vm1, %v2442_v2  ;;  %p3230_p12 = scmp.ne.s32.totalorder %s3196_s23, 0  ;;  %s2458_s7 = smov [#allocation11]  }
 0x1c1   : > { %v805_v7 = vpop.f32.mrb[0].mxu0 }
 0x1c2   : > { %v806_v8 = vadd.f32 %v1833_v6, %v805_v7  ;;  %v1907_v9 = vpop.f32.mrb[1].mxu0 }
 0x1c3   : > { %v808_v10 = vpop.f32.mrb[2].mxu0 }
 0x1c4   : > { %v2937_v11 = vpack.c.bf16 %v806_v8, %v806_v8  ;;  %v1908_v12 = vpop.f32.mrb[3].mxu0 }
 0x1c6   : > { %924 = vrot.lane.b32.xlu1 %v2937_v11, %s2444_s29  ;;  %813 = vrot.lane.b32.xlu0 %v2937_v11, %s2445_s30 }
 0x1ca   : > { %1037 = vrot.lane.b32.xlu1 %v2937_v11, %s2446_s4  ;;  %926 = vrot.lane.b32.xlu0 %v2937_v11, %s2447_s27  ;;  %s1864_s27 = sshll.u32 %s3226_s9, 7 }
 0x1ce   : > { %1148 = vrot.lane.b32.xlu1 %v2937_v11, %s2448_s1  ;;  %1035 = vrot.lane.b32.xlu0 %v2937_v11, %s2449_s13  ;;  %s1572_s1 = sshll.u32 %s2912_s12, 4  ;;  %s3053_s1 = int_to_ptr.vmem [resolvable:$true] %s1572_s1 }
 0x1d2   : > { %1146 = vrot.lane.b32.xlu0 %v2937_v11, %s2450_s6 }
 0x238   : > { %v814_v13 = vpop.permute.xlu0 %813  ;;  %v925_v16 = vpop.permute.xlu1 %924 }
 0x239   : > { %v820_v14 = vsel %vm815_vm3, %v814_v13, 0 }
 0x23a   : > { %1910 = vmatpush3.bf16.xpose.msra.mxu1 %v820_v14 }
 0x23b   : > { %1921 = vmatprep.subr.bf16.mxu1 %v2442_v2 }
 0x23c   : > { %v927_v15 = vpop.permute.xlu0 %926  ;;  %v1038_v18 = vpop.permute.xlu1 %1037 }
 0x23d   : > { %v932_v17 = vsel %vm815_vm3, %v927_v15, 0  ;;  %v1043_v19 = vsel %vm815_vm3, %v1038_v18, 0 }
 0x240   : > { %v1149_v20 = vpop.permute.xlu1 %1148  ;;  %v1036_v21 = vpop.permute.xlu0 %1035 }
 0x241   : > { %1912 = vmatmul.mubr.msk.bf16.vlgmr.msra.gmra.mrb[0].mxu1 %vm815_vm3, %v2937_v11  ;;  %v1154_v22 = vsel %vm815_vm3, %v1149_v20, 0 }
 0x242   : > { %1922 = vmatpush3.bf16.xpose.msra.mxu1 %v932_v17  ;;  %1923 = vmatprep.mubr.msk.bf16.mxu1 %vm2443_vm1, %v2442_v2 }
 0x243   : > { %1933 = vmatprep.subr.bf16.mxu1 %v2442_v2 }
 0x244   : > { %v1147_v23 = vpop.permute.xlu0 %1146 }
 0x249   : > { %1924 = vmatmul.mubr.msk.bf16.vlgmr.msra.gmra.mrb[4].mxu1 %vm815_vm3, %v925_v16 }
 0x24a   : > { %1934 = vmatpush3.bf16.xpose.msra.mxu1 %v1043_v19  ;;  %1935 = vmatprep.mubr.msk.bf16.mxu1 %vm2443_vm1, %v2442_v2 }
 0x24b   : > { %1945 = vmatprep.subr.bf16.mxu1 %v2442_v2 }
 0x251   : > { %1936 = vmatmul.mubr.msk.bf16.vlgmr.msra.gmra.mrb[8].mxu1 %vm815_vm3, %v1036_v21 }
 0x252   : > { %1946 = vmatpush3.bf16.xpose.msra.mxu1 %v1154_v22  ;;  %1947 = vmatprep.mubr.msk.bf16.mxu1 %vm2443_vm1, %v2442_v2 }
 0x253   : > { %1957 = vmatprep.subr.bf16.mxu1 %v2442_v2 }
 0x259   : > { %1948 = vmatmul.mubr.msk.bf16.vlgmr.msra.gmra.mrb[12].mxu1 %vm815_vm3, %v1147_v23 }
 0x25a   : > { %1961 = vmatprep.mubr.msk.bf16.mxu1 %vm2443_vm1, %v2442_v2 }
 0x314   : > { %v856_v24 = vpop.f32.mrb[0].mxu1 }
 0x315   : > { %v1913_v25 = vpop.f32.mrb[1].mxu1  ;;  %v862_v26 = vsel %vm815_vm3, %v856_v24, -inf }
 0x316   : > { %863 = vmax.xlane.f32.xlu1 %v862_v26  ;;  %v859_v27 = vpop.f32.mrb[2].mxu1 }
 0x317   : > { %v1914_v28 = vpop.f32.mrb[3].mxu1  ;;  %v2125_v27 = vld [vmem:[%s2886_s10] sm:$0xff]  }
 0x318   : > { %1958 = vmatpush3.bf16.msra.mxu1 %v2125_v27  ;;  %v2126_v28 = vld [vmem:[%s2886_s10 + $0x8] sm:$0xff]   ;;  %s2457_s10 = smov 24  }
 0x319   : > { %1959 = vmatprep.subr.bf16.mxu1 %v2442_v2 }
 0x31c   : > { %v968_v29 = vpop.f32.mrb[4].mxu1  ;;  %1960 = vmatpush3.bf16.msra.mxu1 %v2126_v28 }
 0x31d   : > { %v1925_v30 = vpop.f32.mrb[5].mxu1  ;;  %v974_v31 = vsel %vm815_vm3, %v968_v29, -inf  ;;  %1973 = vmatprep.subr.bf16.mxu1 %v2442_v2 }
 0x31e   : > { %975 = vmax.xlane.f32.xlu0 %v974_v31  ;;  %v971_v32 = vpop.f32.mrb[6].mxu1 }
 0x31f   : > { %v1926_v33 = vpop.f32.mrb[7].mxu1 }
 0x324   : > { %v1079_v34 = vpop.f32.mrb[8].mxu1 }
 0x325   : > { %v1937_v35 = vpop.f32.mrb[9].mxu1  ;;  %v1085_v36 = vsel %vm815_vm3, %v1079_v34, -inf }
 0x326   : > { %1086 = vmax.xlane.f32.xlu0 %v1085_v36  ;;  %v1082_v37 = vpop.f32.mrb[10].mxu1 }
 0x327   : > { %981 = vrot.lane.b32.xlu1 %v2937_v11, %s2451_s20  ;;  %v1938_v38 = vpop.f32.mrb[11].mxu1  ;;  %s3229_s20 = sld [smem:[#allocation44_spill]] }
 0x32c   : > { %v1190_v39 = vpop.f32.mrb[12].mxu1 }
 0x32d   : > { %v1949_v40 = vpop.f32.mrb[13].mxu1  ;;  %v1196_v43 = vsel %vm815_vm3, %v1190_v39, -inf }
 0x32e   : > { %v1193_v41 = vpop.f32.mrb[14].mxu1 }
 0x32f   : > { %v1950_v42 = vpop.f32.mrb[15].mxu1 }
 0x33c   : > { %869 = vrot.lane.b32.xlu0 %v2937_v11, %s2452_s17  ;;  %s3051_s17 = scalar_lea.hbm %s3229_s20, %s1864_s27 }
 0x340   : > { %1203 = vrot.lane.b32.xlu0 %v2937_v11, %s2453_s22  ;;  %s2305_s22 = scalar_lea.vmem %s3053_s1, 128 }
 0x341   : > { %p2306_p7 = scmp.ne.s32.totalorder %s3053_s1, %s2305_s22 }
 0x343   : > { %p2307_p13 = pnand %p2306_p7, %p3230_p12 }
 0x345   : > { %p2308_p0 = pneg %p2307_p13 }
 0x34b   : > { %1197 = vmax.xlane.f32.xlu1 %v1196_v43 }
 0x35c   : > { %1092 = vrot.lane.b32.xlu1 %v2937_v11, %s2454_s14 }
 0x3a3   : > { %v864_v44 = vpop.xlane.xlu1 %863 }
 0x3a4   : > { %v865_v45 = vsub.f32 %v856_v24, %v864_v44 }
 0x3a6   : > { %v866_v46 = vmul.f32 1.442695, %v865_v45 }
 0x3a7   : > { %v982_v56 = vpop.permute.xlu1 %981 }
 0x3a8   : > { %2133 = vpow2.f32 %v866_v46  ;;  %v987_v60 = vsel %vm874_vm4, %v982_v56, 0 }
 0x3ab   : > { %v976_v47 = vpop.xlane.xlu0 %975 }
 0x3ac   : > { %v977_v48 = vsub.f32 %v968_v29, %v976_v47 }
 0x3ae   : > { %v978_v49 = vmul.f32 1.442695, %v977_v48 }
 0x3b0   : > { %2135 = vpow2.f32 %v978_v49 }
 0x3b2   : > { %v2134_v53 = vpop.eup %2133 }
 0x3b3   : > { %v1087_v50 = vpop.xlane.xlu0 %1086  ;;  %v868_v58 = vpack.c.bf16 %v2134_v53, %v2134_v53  ;;  %v918_v61 = vsel %vm815_vm3, %v2134_v53, 0.0 }
 0x3b4   : > { %v1088_v51 = vsub.f32 %v1079_v34, %v1087_v50 }
 0x3b6   : > { %v1089_v52 = vmul.f32 1.442695, %v1088_v51 }
 0x3b7   : > { %v870_v54 = vpop.permute.xlu0 %869 }
 0x3b8   : > { %2137 = vpow2.f32 %v1089_v52  ;;  %v876_v55 = vsel %vm874_vm4, %v870_v54, 0  ;;  %v1845_v54 = vld [vmem:[%s3222_s21] ss:$0 sm:$0xff] }
 0x3b9   : > { %1916 = vmatpush3.bf16.msra.mxu0 %v876_v55 }
 0x3ba   : > { %v2136_v57 = vpop.eup %2135  ;;  %1927 = vmatprep.subr.bf16.mxu0 %v2442_v2 }
 0x3bb   : > { %v1029_v59 = vsel %vm815_vm3, %v2136_v57, 0.0  ;;  %v980_v63 = vpack.c.bf16 %v2136_v57, %v2136_v57  ;;  %v1204_v8 = vpop.permute.xlu0 %1203 }
 0x3bc   : > { %1030 = vadd.xlane.f32.xlu1 %v1029_v59  ;;  %1918 = vmatmul.mubr.msk.bf16.vlgmr.msra.gmra.mrb[4].mxu0 %vm815_vm3, %v868_v58  ;;  %v1209_v10 = vsel %vm874_vm4, %v1204_v8, 0 }
 0x3bd   : > { %1928 = vmatpush3.bf16.msra.mxu0 %v987_v60  ;;  %1929 = vmatprep.mubr.msk.bf16.mxu0 %vm2443_vm1, %v2442_v2 }
 0x3be   : > { %1939 = vmatprep.subr.bf16.mxu0 %v2442_v2 }
 0x3c0   : > { %919 = vadd.xlane.f32.xlu1 %v918_v61 }
 0x3c2   : > { %v2138_v62 = vpop.eup %2137 }
 0x3c3   : > { %v1140_v0 = vsel %vm815_vm3, %v2138_v62, 0.0  ;;  %v1091_v9 = vpack.c.bf16 %v2138_v62, %v2138_v62 }
 0x3c4   : > { %1141 = vadd.xlane.f32.xlu0 %v1140_v0  ;;  %1930 = vmatmul.mubr.msk.bf16.vlgmr.msra.gmra.mrb[8].mxu0 %vm815_vm3, %v980_v63 }
 0x3c5   : > { %1941 = vmatprep.mubr.msk.bf16.mxu0 %vm2443_vm1, %v2442_v2 }
 0x3d8   : > { %v1198_v1 = vpop.xlane.xlu1 %1197 }
 0x3d9   : > { %v1199_v3 = vsub.f32 %v1190_v39, %v1198_v1 }
 0x3db   : > { %v1200_v5 = vmul.f32 1.442695, %v1199_v3 }
 0x3dc   : > { %v1093_v6 = vpop.permute.xlu1 %1092 }
 0x3dd   : > { %2139 = vpow2.f32 %v1200_v5  ;;  %v1098_v7 = vsel %vm874_vm4, %v1093_v6, 0  ;;  %v2127_v5 = vld [vmem:[%s2891_s19] sm:$0xff]   ;;  %v2128_v6 = vld [vmem:[%s2891_s19 + $0x8] sm:$0xff]  }
 0x3de   : > { %1940 = vmatpush3.bf16.msra.mxu0 %v1098_v7 }
 0x3df   : > { %1951 = vmatprep.subr.bf16.mxu0 %v2442_v2 }
 0x3e1   : > { %1942 = vmatmul.mubr.msk.bf16.vlgmr.msra.gmra.mrb[12].mxu0 %vm815_vm3, %v1091_v9 }
 0x3e2   : > { %1952 = vmatpush3.bf16.msra.mxu0 %v1209_v10  ;;  %1953 = vmatprep.mubr.msk.bf16.mxu0 %vm2443_vm1, %v2442_v2  ;;  %v1849_v10 = vld [vmem:[%s3223_s5] ss:$0 sm:$0xff] }
 0x3e3   : > { %1965 = vmatprep.subr.bf16.mxu0 %v2442_v2 }
 0x3e7   : > { %v2140_v11 = vpop.eup %2139 }
 0x3e8   : > { %v1251_v12 = vsel %vm815_vm3, %v2140_v11, 0.0  ;;  %v1202_v13 = vpack.c.bf16 %v2140_v11, %v2140_v11 }
 0x3e9   : > { %1252 = vadd.xlane.f32.xlu0 %v1251_v12  ;;  %v1850_v12 = vld [vmem:[%s3224_s8] ss:$0 sm:$0xff] }
 0x3ea   : > { %1954 = vmatmul.mubr.msk.bf16.vlgmr.msra.gmra.mrb[16].mxu0 %vm815_vm3, %v1202_v13 }
 0x3eb   : > { %1969 = vmatprep.mubr.msk.bf16.mxu0 %vm2443_vm1, %v2442_v2  ;;  %1966 = vmatpush3.bf16.msra.mxu0 %v2127_v5 }
 0x3ec   : > { %1967 = vmatprep.subr.bf16.mxu0 %v2442_v2 }
 0x3ef   : > { %1968 = vmatpush3.bf16.msra.mxu0 %v2128_v6 }
 0x449   : > { %v1031_v14 = vpop.xlane.xlu1 %1030 }
 0x44a   : > { %2141 = vrcp.f32 %v1031_v14 }
 0x44d   : > { %v920_v44 = vpop.xlane.xlu1 %919 }
 0x451   : > { %v1142_v26 = vpop.xlane.xlu0 %1141 }
 0x452   : > { %2143 = vrcp.f32 %v1142_v26 }
 0x454   : > { %v2142_v19 = vpop.eup %2141 }
 0x45c   : > { %v2144_v30 = vpop.eup %2143 }
 0x476   : > { %v1253_v29 = vpop.xlane.xlu0 %1252 }
 0x477   : > { %2145 = vrcp.f32 %v1253_v29 }
 0x478   : > { %2147 = vrcp.f32 %v920_v44 }
 0x481   : > { %v2146_v37 = vpop.eup %2145 }
 0x482   : > { %v2148_v45 = vpop.eup %2147 }
 0x48f   : > { %v912_v15 = vpop.f32.mrb[4].mxu0 }
 0x490   : > { %v1919_v16 = vpop.f32.mrb[5].mxu0  ;;  %v922_v46 = vmul.f32 %v2148_v45, %v912_v15 }
 0x491   : > { %v915_v17 = vpop.f32.mrb[6].mxu0  ;;  %v2129_v16 = vld [vmem:[%s2897_s25] sm:$0xff]  }
 0x492   : > { %v1920_v18 = vpop.f32.mrb[7].mxu0  ;;  %v923_v49 = vpack.c.bf16 %v922_v46, %v922_v46  ;;  %v2130_v17 = vld [vmem:[%s2897_s25 + $0x8] sm:$0xff]  }
 0x493   : > { %v2131_v18 = vld [vmem:[%s2897_s25 + $0x10] sm:$0xff]  }
 0x497   : > { %v1023_v20 = vpop.f32.mrb[8].mxu0 }
 0x498   : > { %v1033_v21 = vmul.f32 %v2142_v19, %v1023_v20  ;;  %v1931_v22 = vpop.f32.mrb[9].mxu0  ;;  %v2132_v19 = vld [vmem:[%s2897_s25 + $0x18] sm:$0xff]   ;;  %v1851_v20 = vld [vmem:[%s611_s0] ss:$0 sm:$0xff] }
 0x499   : > { %v1026_v23 = vpop.f32.mrb[10].mxu0 }
 0x49a   : > { %v1034_v24 = vpack.c.bf16 %v1033_v21, %v1033_v21  ;;  %v1932_v25 = vpop.f32.mrb[11].mxu0 }
 0x49c   : > { %1258 = vrot.lane.b32.xlu0 %v1034_v24, %s2455_s11 }
 0x4b4   : > { %v1134_v31 = vpop.f32.mrb[12].mxu0 }
 0x4b5   : > { %v1144_v32 = vmul.f32 %v2144_v30, %v1134_v31  ;;  %v1943_v33 = vpop.f32.mrb[13].mxu0 }
 0x4b6   : > { %v1137_v34 = vpop.f32.mrb[14].mxu0 }
 0x4b7   : > { %v1145_v35 = vpack.c.bf16 %v1144_v32, %v1144_v32  ;;  %v1944_v36 = vpop.f32.mrb[15].mxu0 }
 0x4b9   : > { %1261 = vrot.lane.b32.xlu1 %v1145_v35, %s2456_s3 }
 0x4bd   : > { %v1245_v38 = vpop.f32.mrb[16].mxu0 }
 0x4be   : > { %v1255_v39 = vmul.f32 %v2146_v37, %v1245_v38  ;;  %v1955_v40 = vpop.f32.mrb[17].mxu0 }
 0x4bf   : > { %v1248_v41 = vpop.f32.mrb[18].mxu0 }
 0x4c0   : > { %v1256_v42 = vpack.c.bf16 %v1255_v39, %v1255_v39  ;;  %v1956_v43 = vpop.f32.mrb[19].mxu0 }
 0x4c2   : > { %1264 = vrot.lane.b32.xlu1 %v1256_v42, %s2457_s10 }
 0x50e   : > { %v1259_v47 = vpop.permute.xlu0 %1258 }
 0x50f   : > { %v1268_v50 = vsel %vm815_vm3, %v923_v49, %v1259_v47 }
 0x52b   : > { %v1262_v48 = vpop.permute.xlu1 %1261 }
 0x52c   : > { %v1271_v51 = vsel %vm1269_vm5, %v1268_v50, %v1262_v48  ;;  %v1861_v48 = vld [vmem:[%s730_s15] ss:$0 sm:$0xff]  ;;  %s1559_s15 = scalar_lea.sflag [#allocation4], %s2848_s16 }
 0x52d   : > { %v1862_v50 = vld [vmem:[%s733_s2] ss:$0 sm:$0xff]  ;;  %s2309_s2 = sshll.u32 %s2458_s7, 4  ;;  %s2310_s2 = int_to_ptr.vmem [resolvable:$false] %s2309_s2 }
 0x52e   : > { %s2311_s14 = scalar_lea.vmem %s2310_s2, 256  ;;  %p2312_p4 = scmp.lt.s32.totalorder %s3053_s1, %s2310_s2 }
 0x52f   : > { %p2313_p1 = scmp.lt.s32.totalorder %s2311_s14, %s2305_s22 }
 0x531   : > { %p2314_p3 = por %p2313_p1, %p2312_p4 }
 0x533   : > { %p2315_p5 = pnand %p2314_p3, %p2308_p0 }
 0x534   : > { %v1265_v52 = vpop.permute.xlu1 %1264 }
 0x535   : > { %v1274_v53 = vsel %vm1272_vm6, %v1271_v51, %v1265_v52 }
 0x536   : > { %1962 = vmatmul.mubr.msk.bf16.vlgmr.msra.gmra.mrb[16].mxu1 %vm767_vm2, %v1274_v53 }
 0x537   : > { %1981 = vmatprep.mubr.msk.bf16.mxu1 %vm2443_vm1, %v2442_v2  ;;  %1974 = vmatpush3.bf16.msra.mxu1 %v2129_v16 }
 0x538   : > { %1975 = vmatprep.subr.bf16.mxu1 %v2442_v2 }
 0x53b   : > { %1976 = vmatpush3.bf16.msra.mxu1 %v2130_v17 }
 0x53c   : > { %1977 = vmatprep.subr.bf16.mxu1 %v2442_v2 }
 0x53f   : > { %1978 = vmatpush3.bf16.msra.mxu1 %v2131_v18 }
 0x540   : > { %1979 = vmatprep.subr.bf16.mxu1 %v2442_v2  ;;  %v1855_v2 = vld [vmem:[%s727_s24] ss:$0 sm:$0xff] }
 0x543   : > { %1980 = vmatpush3.bf16.msra.mxu1 %v2132_v19 }
 0x609   : > { %v1334_v55 = vpop.f32.mrb[16].mxu1 }
 0x60a   : > { %v1335_v56 = vadd.f32 %v1845_v54, %v1334_v55  ;;  %v1963_v57 = vpop.f32.mrb[17].mxu1 }
 0x60b   : > { %v1337_v58 = vpop.f32.mrb[18].mxu1 }
 0x60c   : > { %v1964_v59 = vpop.f32.mrb[19].mxu1  ;;  %v1340_v60 = vadd.f32 %v1335_v56, %v2921_v4 }
 0x60e   : > { %v1343_v61 = vsel %vm767_vm2, %v1340_v60, 0.0 }
 0x60f   : > { %1344 = vadd.xlane.f32.xlu0 %v1343_v61 }
 0x69c   : > { %v1345_v62 = vpop.xlane.xlu0 %1344 }
 0x69d   : > { %v1347_v63 = vmul.f32 0.03125, %v1345_v62 }
 0x69f   : > { %v1348_v0 = vsub.f32 %v1340_v60, %v1347_v63 }
 0x6a1   : > { %v1349_v1 = vmul.f32 %v1348_v0, %v1348_v0 }
 0x6a3   : > { %v1350_v3 = vsel %vm767_vm2, %v1349_v1, 0.0 }
 0x6a4   : > { %1351 = vadd.xlane.f32.xlu1 %v1350_v3 }
 0x731   : > { %v1352_v4 = vpop.xlane.xlu1 %1351 }
 0x732   : > { %v1353_v7 = vmul.f32 0.03125, %v1352_v4 }
 0x734   : > { %v1354_v8 = vadd.f32 1e-05, %v1353_v7 }
 0x736   : > { %2149 = vrsqrt.f32 %v1354_v8 }
 0x740   : > { %v2150_v9 = vpop.eup %2149 }
 0x741   : > { %v1356_v11 = vmul.f32 %v2150_v9, %v1348_v0 }
 0x743   : > { %v1363_v13 = vmul.f32 %v1849_v10, %v1356_v11 }
 0x745   : > { %v1370_v14 = vadd.f32 %v1850_v12, %v1363_v13 }
 0x747   : > { %v1371_v15 = vpack.c.bf16 %v1370_v14, %v1370_v14 }
 0x749   : > { %1970 = vmatmul.mubr.msk.bf16.vlgmr.msra.gmra.mrb[20].mxu0 %vm767_vm2, %v1371_v15 }
 0x81c   : > { %v1432_v21 = vpop.f32.mrb[20].mxu0 }
 0x81d   : > { %v1433_v22 = vadd.f32 %v1851_v20, %v1432_v21  ;;  %v1971_v23 = vpop.f32.mrb[21].mxu0 }
 0x81e   : > { %v1435_v24 = vpop.f32.mrb[22].mxu0 }
 0x81f   : > { %v1439_v25 = vmul.f32 0.70710677, %v1433_v22  ;;  %v1972_v26 = vpop.f32.mrb[23].mxu0  ;;  %v1438_v28 = vmul.f32 0.5, %v1433_v22 }
 0x821   : > { %2151 = verf.f32 %v1439_v25 }
 0x82b   : > { %v2152_v27 = vpop.eup %2151 }
 0x82c   : > { %v1441_v29 = vadd.f32 1.0, %v2152_v27 }
 0x82e   : > { %v1442_v30 = vmul.f32 %v1441_v29, %v1438_v28 }
 0x830   : > { %v1443_v31 = vpack.c.bf16 %v1442_v30, %v1442_v30 }
 0x832   : > { %1982 = vmatmul.mubr.msk.bf16.vlgmr.msra.gmra.mrb[20].mxu1 %vm1483_vm7, %v1443_v31 }
 0x905   : > { %v1521_v32 = vpop.f32.mrb[20].mxu1 }
 0x906   : > { %v1522_v33 = vadd.f32 %v1855_v2, %v1521_v32  ;;  %v1983_v34 = vpop.f32.mrb[21].mxu1 }
 0x907   : > { %v1524_v35 = vpop.f32.mrb[22].mxu1 }
 0x908   : > { %v1984_v36 = vpop.f32.mrb[23].mxu1  ;;  %v1527_v37 = vadd.f32 %v1522_v33, %v1370_v14 }
 0x90a   : > { %v1530_v38 = vsel %vm767_vm2, %v1527_v37, 0.0 }
 0x90b   : > { %1531 = vadd.xlane.f32.xlu0 %v1530_v38 }
 0x998   : > { %v1532_v39 = vpop.xlane.xlu0 %1531 }
 0x999   : > { %v1533_v40 = vmul.f32 0.03125, %v1532_v39 }
 0x99b   : > { %v1534_v41 = vsub.f32 %v1527_v37, %v1533_v40 }
 0x99d   : > { %v1535_v42 = vmul.f32 %v1534_v41, %v1534_v41 }
 0x99f   : > { %v1536_v43 = vsel %vm767_vm2, %v1535_v42, 0.0 }
 0x9a0   : > { %1537 = vadd.xlane.f32.xlu0 %v1536_v43 }
 0xa2d   : > { %v1538_v44 = vpop.xlane.xlu0 %1537 }
 0xa2e   : > { %v1539_v45 = vmul.f32 0.03125, %v1538_v44 }
 0xa30   : > { %v1540_v46 = vadd.f32 1e-05, %v1539_v45 }
 0xa32   : > { %2153 = vrsqrt.f32 %v1540_v46 }
 0xa3c   : > { %v2154_v47 = vpop.eup %2153 }
 0xa3d   : > { %v1542_v49 = vmul.f32 %v2154_v47, %v1534_v41 }
 0xa3f   : > { %v1549_v51 = vmul.f32 %v1861_v48, %v1542_v49 }
 0xa41   : > { %v1556_v52 = vadd.f32 %v1862_v50, %v1549_v51 }
 0xa43   : > { %1557 = vst.msk [vmem:[%s2912_s12] sm:$0xff] %vm767_vm2, %v1556_v52 }
 0xa44   : > { %2318 = shalt.err (!%p2315_p5)
}
 0xa45   : > { %s2319_s16 = scalar_lea.hbm %s3051_s17, 128  ;;  %s2323_s3 = scalar_lea.hbm %s3229_s20, 256 }
 0xa46   : > { %p2320_p10 = scmp.ne.s32.totalorder %s3051_s17, %s2319_s16  ;;  %p2324_p9 = scmp.lt.u32.totalorder %s3051_s17, %s3229_s20 }
 0xa47   : > { %p2325_p2 = scmp.lt.u32.totalorder %s2323_s3, %s2319_s16  ;;  %p2327_p7 = scmp.lt.u32.totalorder %s2319_s16, %s3051_s17 }
 0xa48   : > { %p2321_p8 = pnand %p2320_p10, %p3230_p12 }
 0xa49   : > { %p2326_p6 = por %p2325_p2, %p2324_p9 }
 0xa4a   : > { %p2322_p11 = pneg %p2321_p8 }
 0xa4b   : > { %p2328_p13 = por %p2327_p7, %p2326_p6 }
 0xa4d   : > { %p2329_p0 = pnand %p2328_p13, %p2322_p11 }
 0xa4f   : > { %2332 = shalt.err (!%p2329_p0)
}
 0xa50   : > { %1995 = dma.vmem_to_hbm [thread:$0]  (%p3230_p12), %s3053_s1, 128, %s3051_s17, %s1559_s15  }
 0xa51 PF: > { %s3231_s5 = sld [smem:[#allocation18_spill]]  ;;  %s3232_s8 = sld [smem:[#allocation30_spill]] }
 0xa52   : > { %p2018_p4 = scmp.ge.s32.totalorder %s2435_s18, 2 }
 0xa57   : > { %s1584_s19 = sand.u32 1, %s3231_s5   ;;  %p3233_p1 = scmp.ne.s32.totalorder %s3232_s8, 0 }
 0xa58   : > { %s1585_s25 = scalar_lea.sflag [#allocation4], %s1584_s19 }
 0xa59   : > { %p2014_p3 = pnand %p2018_p4, %p3233_p1 }
 0xa5b   : > { %2390 = dma.done.wait (!%p2014_p3), %s1585_s25, 128  }
 0xa5c   : > { %2392 = vsyncadd (!%p2014_p3), %s1585_s25, 4294967168  ;;  %s35_s18 = sadd.s32 1, %s2435_s18   ;;  %s3234_s25 = sld [smem:[#allocation16_spill]] }
 0xa5d   : > { %p32_p5 = scmp.ge.s32.totalorder %s35_s18, 6   ;;  %s3235_s26 = sld [smem:[#allocation17_spill]] }
 0xa5e   : > { %s3236_s27 = sld [smem:[#allocation26_spill]]  ;;  %s3237_s28 = sld [smem:[#allocation19_spill]] }
 0xa5f   : > { %s3238_s29 = sld [smem:[#allocation20_spill]]  ;;  %s3239_s30 = sld [smem:[#allocation29_spill]] }
 0xa60   : > { %s3240_s14 = sld [smem:[#allocation23_spill]]  ;;  %s3241_s15 = sld [smem:[#allocation24_spill]] }
 0xa61   : > { %s3242_s16 = sld [smem:[#allocation25_spill]]  ;;  %s3243_s17 = sld [smem:[#allocation27_spill]] }
 0xa62   :  { %34 = sbr.rel (!%p32_p5) target bundleno = 28 (0x1c), region = 193 }
 0xa69   :  { %1590 = vsyncpa [#allocation3], 1 }
 0xa6a   :  { %1592 = vsyncpa [#allocation3 + $0x1], 1 }
 0xa6b   :  { %1593 = vsyncpa [#allocation6], 1 }
 0xa6c   :  { %1595 = vsyncpa [#allocation6 + $0x1], 1 }
 0xa6d   :  { %1596 = vsyncpa [#allocation9], 1 }
 0xa6e   :  { %1598 = vsyncpa [#allocation9 + $0x1], 1 }
 0xa6f   :  { %1599 = vsyncpa [#allocation4], 1 }
 0xa70   :  { %1601 = vsyncpa [#allocation4 + $0x1], 1 }

</bundles_post_ra>
